<compile_context>
chip_gen: v6e
topology: v6e:2x2x1
jax: 0.10.0
libtpu: 0.0.40
codegen_flags: <defaults>
</compile_context>

<pallas_src>
import functools

import jax
import jax.numpy as jnp
from jax import lax
from jax.experimental import pallas as pl
from jax.experimental.pallas import tpu as pltpu


def _round_up(x, m):
    return (x + m - 1) // m * m


def lstm_chunk_kernel(x_ref, wih_ref, whh_ref, b_ref,
                      out_ref, h_ref, c_ref,
                      gx_ref, h_sc, c_sc,
                      *, seq_len, unroll):
    """One (batch-block, time-chunk) grid step of a single-layer LSTM.

    x_ref:   (1, Tc*Bb, E)   embedded inputs for this chunk, rows time-major
    wih_ref: (E, 4*Hp)       input->hidden weights, gate-major padded (i,f,o,g)
    whh_ref: (Hp, 4*Hp)      hidden->hidden weights, gate-major padded (i,f,o,g)
    b_ref:   (1, 4*Hp)       b_ih + b_hh, gate-major padded (f32)
    out_ref: (Tc, Bb, Hp)    per-step hidden states of this chunk (f32)
    h_ref:   (Bb, Hp)        final hidden state (f32)
    c_ref:   (Bb, Hp)        final cell state (f32)
    gx_ref:  (Tc*Bb, 4*Hp)   scratch: this chunk's input projections (f32)
    h_sc/c_sc: (Bb, Hp)      recurrent carry, persists across time chunks (f32)
    """
    tc, bb, hp = out_ref.shape
    t_chunk = pl.program_id(1)

    # Reset the recurrent carry at the first time chunk of each batch block.
    @pl.when(t_chunk == 0)
    def _():
        h_sc[...] = jnp.zeros_like(h_sc)
        c_sc[...] = jnp.zeros_like(c_sc)

    # ---- Phase 1 (per chunk): input projection for all chunk steps in one ----
    # MXU matmul, bias folded in.  The next chunk's x slab is DMA-prefetched by
    # the BlockSpec pipeline while this chunk's recurrence runs below.
    gx_ref[...] = (
        jnp.dot(x_ref[0], wih_ref[...], preferred_element_type=jnp.float32)
        + b_ref[...]
    )

    needs_mask = (seq_len % tc) != 0
    chunk_start = t_chunk * tc  # first global timestep of this chunk

    # ---- Phase 2: serial recurrence; only h @ W_hh^T on the critical path ----
    def step(t, carry):
        h, c = carry                                     # f32 (Bb, Hp)
        row = pl.multiple_of(t * bb, 8)                  # sublane-aligned slice
        gates = gx_ref[pl.ds(row, bb), :] + jnp.dot(
            h.astype(whh_ref.dtype), whh_ref[...],
            preferred_element_type=jnp.float32)
        # Gate layout (i, f, o, g): one sigmoid over the first 3*Hp lanes and
        # one tanh over the last Hp lanes (fewer EUP kickoffs per step).
        sig = jax.nn.sigmoid(gates[:, :3 * hp])
        g_g = jnp.tanh(gates[:, 3 * hp:])
        i_g = sig[:, 0 * hp:1 * hp]
        f_g = sig[:, 1 * hp:2 * hp]
        o_g = sig[:, 2 * hp:3 * hp]
        c_new = f_g * c + i_g * g_g                      # elementwise in f32
        h_new = o_g * jnp.tanh(c_new)
        out_ref[t] = h_new                               # lane-dense (Bb, Hp)
        if needs_mask:
            # Padded timesteps (only in the last chunk) must not advance the
            # carry, so the final hidden/cell come from the last *real* step.
            valid = (chunk_start + t) < seq_len
            h_new = jnp.where(valid, h_new, h)
            c_new = jnp.where(valid, c_new, c)
        return h_new, c_new

    h_f, c_f = lax.fori_loop(0, tc, step, (h_sc[...], c_sc[...]), unroll=unroll)

    h_sc[...] = h_f
    c_sc[...] = c_f
    h_ref[...] = h_f
    c_ref[...] = c_f


def encoder_forward(src, emb_table, w_ih, w_hh, b_ih, b_hh, *,
                    compute_dtype=jnp.bfloat16, max_time_chunk=64):
    """Equivalent of Encoder.forward(src) -> (outputs, hidden, cell).

    Matmul operands are cast to `compute_dtype` (bf16, MXU-native on all TPU
    generations); accumulation and the elementwise cell math stay in f32.
    """
    B, T = src.shape
    E = emb_table.shape[1]
    H = w_hh.shape[1]

    Hp = _round_up(H, 128)            # lane multiple -> lane-dense gate tiles
    # Batch padding / blocking.  Two batch blocks give a "parallel" grid axis
    # that v7x's two TensorCores can shard; one block for tiny batches.
    if B > 8:
        Bp = _round_up(B, 16)
        n_b = 2
    else:
        Bp = _round_up(B, 8)
        n_b = 1
    Bb = Bp // n_b

    csize = jnp.dtype(compute_dtype).itemsize

    def vmem_bytes(tc):
        return (
            2 * tc * Bb * E * csize          # x chunk (double-buffered)
            + E * 4 * Hp * csize             # W_ih
            + Hp * 4 * Hp * csize            # W_hh
            + 4 * Hp * 4                     # bias
            + 2 * tc * Bb * Hp * 4           # out chunk (double-buffered)
            + 2 * 2 * Bb * Hp * 4            # final h / c output blocks
            + tc * Bb * 4 * Hp * 4           # gates_x scratch (per chunk)
            + 2 * Bb * Hp * 4                # h / c carry scratch
        )

    # Pick the time chunk so the working set leaves double-buffer headroom even
    # on v7x's 64 MiB VMEM (v5e/v6e have 128 MiB physical).
    budget = 48 * 1024 * 1024
    tc = max(1, min(max_time_chunk, T))
    while tc > 8 and vmem_bytes(tc) > budget:
        tc = max(8, tc // 2)
    assert vmem_bytes(tc) <= budget, (
        "LSTM weights + minimal chunk exceed the VMEM budget; tile the 4*Hp "
        "gate axis as well for this hidden size.")

    Tp = _round_up(T, tc)
    n_t = Tp // tc

    # Embedding lookup (data-dependent gather) — glue, done in plain JAX.
    embedded = jnp.take(emb_table, src, axis=0)               # (B, T, E) f32

    # Time-major, pad batch to Bp and time to Tp, then group rows by batch
    # block so each grid step sees a clean 2-D matmul slab:
    #   (n_b, Tp*Bb, E), rows within a block ordered time-major.
    x = jnp.transpose(embedded, (1, 0, 2))                    # (T, B, E)
    x = jnp.pad(x, ((0, Tp - T), (0, Bp - B), (0, 0)))        # (Tp, Bp, E)
    x = x.reshape(Tp, n_b, Bb, E).transpose(1, 0, 2, 3)       # (n_b, Tp, Bb, E)
    x = x.reshape(n_b, Tp * Bb, E).astype(compute_dtype)      # (n_b, Tp*Bb, E)

    # Weights -> gate-major padded layout (rows, 4, Hp) flattened to (rows, 4*Hp),
    # with gates permuted from PyTorch's (i, f, g, o) to (i, f, o, g) so the
    # three sigmoid gates form one contiguous lane-dense slice.
    perm = jnp.array([0, 1, 3, 2])
    wih_p = jnp.transpose(
        jnp.pad(w_ih.reshape(4, H, E)[perm], ((0, 0), (0, Hp - H), (0, 0))),
        (2, 0, 1)).reshape(E, 4 * Hp).astype(compute_dtype)    # (E, 4*Hp)
    whh_p = jnp.transpose(
        jnp.pad(w_hh.reshape(4, H, H)[perm], ((0, 0), (0, Hp - H), (0, Hp - H))),
        (2, 0, 1)).reshape(Hp, 4 * Hp).astype(compute_dtype)   # (Hp, 4*Hp)
    b_p = jnp.pad((b_ih + b_hh).reshape(4, H)[perm],
                  ((0, 0), (0, Hp - H))).reshape(1, 4 * Hp).astype(jnp.float32)

    kernel = functools.partial(lstm_chunk_kernel, seq_len=T, unroll=min(8, tc))
    vmem_limit = min(budget, max(16 * 1024 * 1024, int(vmem_bytes(tc) * 5) // 4))

    out_tbh, h_last, c_last = pl.pallas_call(
        kernel,
        out_shape=(
            jax.ShapeDtypeStruct((Tp, Bp, Hp), jnp.float32),   # per-step outputs
            jax.ShapeDtypeStruct((Bp, Hp), jnp.float32),       # final hidden
            jax.ShapeDtypeStruct((Bp, Hp), jnp.float32),       # final cell
        ),
        grid_spec=pltpu.PrefetchScalarGridSpec(
            num_scalar_prefetch=0,
            grid=(n_b, n_t),                                   # (batch-block, T-chunk)
            in_specs=[
                pl.BlockSpec((1, tc * Bb, E), lambda b, t: (b, t, 0)),   # x chunk
                pl.BlockSpec((E, 4 * Hp), lambda b, t: (0, 0)),          # W_ih
                pl.BlockSpec((Hp, 4 * Hp), lambda b, t: (0, 0)),         # W_hh
                pl.BlockSpec((1, 4 * Hp), lambda b, t: (0, 0)),          # bias
            ],
            out_specs=(
                pl.BlockSpec((tc, Bb, Hp), lambda b, t: (t, b, 0)),      # outputs
                pl.BlockSpec((Bb, Hp), lambda b, t: (b, 0)),             # final h
                pl.BlockSpec((Bb, Hp), lambda b, t: (b, 0)),             # final c
            ),
            scratch_shapes=[
                pltpu.VMEM((tc * Bb, 4 * Hp), jnp.float32),   # gates_x (chunk)
                pltpu.VMEM((Bb, Hp), jnp.float32),            # h carry
                pltpu.VMEM((Bb, Hp), jnp.float32),            # c carry
            ],
        ),
        compiler_params=pltpu.CompilerParams(
            dimension_semantics=("parallel", "arbitrary"),
            vmem_limit_bytes=vmem_limit,
        ),
    )(x, wih_p, whh_p, b_p)

    # Drop padding, back to batch-first like PyTorch (cheap XLA layout pass).
    outputs = jnp.transpose(out_tbh[:T, :B, :H], (1, 0, 2))    # (B, T, H)
    hidden = h_last[:B, :H][None, :, :]                        # (1, B, H)
    cell = c_last[:B, :H][None, :, :]                          # (1, B, H)
    return outputs, hidden, cell


def encoder_reference(src, emb_table, w_ih, w_hh, b_ih, b_hh,
                      *, compute_dtype=jnp.bfloat16):
    """Pure-JAX reference with matching precision (bf16 matmul operands, f32
    accumulation/elementwise), torch.nn.LSTM gate order (i, f, g, o)."""
    B, T = src.shape
    H = w_hh.shape[1]
    embedded = jnp.take(emb_table, src, axis=0)                # (B, T, E)
    x_tbe = jnp.transpose(embedded, (1, 0, 2)).astype(compute_dtype)
    wih_t = w_ih.T.astype(compute_dtype)
    whh_t = w_hh.T.astype(compute_dtype)
    bias = (b_ih + b_hh).astype(jnp.float32)

    def step(carry, x_t):
        h, c = carry
        gates = (
            jnp.dot(x_t, wih_t, preferred_element_type=jnp.float32)
            + jnp.dot(h.astype(compute_dtype), whh_t,
                      preferred_element_type=jnp.float32)
            + bias
        )
        i_g = jax.nn.sigmoid(gates[:, 0 * H:1 * H])
        f_g = jax.nn.sigmoid(gates[:, 1 * H:2 * H])
        g_g = jnp.tanh(gates[:, 2 * H:3 * H])
        o_g = jax.nn.sigmoid(gates[:, 3 * H:4 * H])
        c_new = f_g * c + i_g * g_g
        h_new = o_g * jnp.tanh(c_new)
        return (h_new, c_new), h_new

    h0 = jnp.zeros((B, H), jnp.float32)
    c0 = jnp.zeros((B, H), jnp.float32)
    (h_f, c_f), out_tbh = lax.scan(step, (h0, c0), x_tbe)
    return jnp.transpose(out_tbh, (1, 0, 2)), h_f[None], c_f[None]


if __name__ == "__main__":
    VOCAB = 32
    EMB = 16
    HIDDEN = 32

    key = jax.random.PRNGKey(0)
    k_emb, k_wih, k_whh, k_bih, k_bhh, k_src, k_src2 = jax.random.split(key, 7)

    # PyTorch-style uniform(-1/sqrt(H), 1/sqrt(H)) LSTM init.
    s = 1.0 / jnp.sqrt(jnp.float32(HIDDEN))
    emb_table = jax.random.normal(k_emb, (VOCAB, EMB), jnp.float32)
    w_ih = jax.random.uniform(k_wih, (4 * HIDDEN, EMB), jnp.float32, -s, s)
    w_hh = jax.random.uniform(k_whh, (4 * HIDDEN, HIDDEN), jnp.float32, -s, s)
    b_ih = jax.random.uniform(k_bih, (4 * HIDDEN,), jnp.float32, -s, s)
    b_hh = jax.random.uniform(k_bhh, (4 * HIDDEN,), jnp.float32, -s, s)

    # --- Test 1: small shapes consistent with the module (B=2, T=8). ---
    B, T = 2, 8
    src = jax.random.randint(k_src, (B, T), 0, VOCAB, dtype=jnp.int32)
    outputs, hidden, cell = jax.jit(encoder_forward)(
        src, emb_table, w_ih, w_hh, b_ih, b_hh)
    jax.block_until_ready((outputs, hidden, cell))

    ref_out, ref_h, ref_c = encoder_reference(src, emb_table, w_ih, w_hh, b_ih, b_hh)
    assert outputs.shape == (B, T, HIDDEN)
    assert hidden.shape == (1, B, HIDDEN)
    assert cell.shape == (1, B, HIDDEN)
    assert jnp.allclose(outputs, ref_out, atol=1e-3, rtol=1e-3)
    assert jnp.allclose(hidden, ref_h, atol=1e-3, rtol=1e-3)
    assert jnp.allclose(cell, ref_c, atol=1e-3, rtol=1e-3)

    # --- Test 2: exercise multi-chunk time tiling, tail masking and the 2-way
    # batch-block ("parallel") grid axis (B=12 -> two blocks, T=19, chunk=8). ---
    B2, T2 = 12, 19
    src2 = jax.random.randint(k_src2, (B2, T2), 0, VOCAB, dtype=jnp.int32)
    fwd2 = jax.jit(functools.partial(encoder_forward, max_time_chunk=8))
    out2, hid2, cel2 = fwd2(src2, emb_table, w_ih, w_hh, b_ih, b_hh)
    jax.block_until_ready((out2, hid2, cel2))

    r_out2, r_h2, r_c2 = encoder_reference(src2, emb_table, w_ih, w_hh, b_ih, b_hh)
    assert out2.shape == (B2, T2, HIDDEN)
    assert jnp.allclose(out2, r_out2, atol=1e-3, rtol=1e-3)
    assert jnp.allclose(hid2, r_h2, atol=1e-3, rtol=1e-3)
    assert jnp.allclose(cel2, r_c2, atol=1e-3, rtol=1e-3)

    print("KERNEL_OK")
</pallas_src>

<mosaic_0001>
module attributes {stable_mosaic.version = 11 : i64} {
  func.func @lstm_chunk_kernel(%arg0: i32, %arg1: i32, %arg2: memref<1x64x16xbf16, #tpu.memory_space<vmem>>, %arg3: memref<16x512xbf16, #tpu.memory_space<vmem>>, %arg4: memref<128x512xbf16, #tpu.memory_space<vmem>>, %arg5: memref<1x512xf32, #tpu.memory_space<vmem>>, %arg6: memref<8x8x128xf32, #tpu.memory_space<vmem>>, %arg7: memref<8x128xf32, #tpu.memory_space<vmem>>, %arg8: memref<8x128xf32, #tpu.memory_space<vmem>>, %arg9: memref<64x512xf32, #tpu.memory_space<vmem>>, %arg10: memref<8x128xf32, #tpu.memory_space<vmem>>, %arg11: memref<8x128xf32, #tpu.memory_space<vmem>>) attributes {dimension_semantics = [#tpu.dimension_semantics<parallel>, #tpu.dimension_semantics<arbitrary>], iteration_bounds = array<i64: 1, 1>, scalar_prefetch = 0 : i64, scratch_operands = 3 : i64, tpu.core_type = #tpu.core_type<tc>, window_params = [{transform_indices = @transform_0, window_bounds = array<i64: 1, 64, 16>}, {pipeline_mode = #tpu.pipeline_mode<synchronous>, transform_indices = @transform_1, window_bounds = array<i64: 16, 512>}, {pipeline_mode = #tpu.pipeline_mode<synchronous>, transform_indices = @transform_2, window_bounds = array<i64: 128, 512>}, {pipeline_mode = #tpu.pipeline_mode<synchronous>, transform_indices = @transform_3, window_bounds = array<i64: 1, 512>}, {transform_indices = @transform_4, window_bounds = array<i64: 8, 8, 128>}, {transform_indices = @transform_5, window_bounds = array<i64: 8, 128>}, {transform_indices = @transform_6, window_bounds = array<i64: 8, 128>}]} {
    %c0_i32 = arith.constant 0 : i32
    %0 = arith.cmpi eq, %arg1, %c0_i32 : i32
    %1 = arith.extui %0 : i1 to i32
    %c0_i32_0 = arith.constant 0 : i32
    %2 = arith.cmpi ne, %1, %c0_i32_0 : i32
    scf.if %2 {
      %cst_86 = arith.constant 0.000000e+00 : f32
      %241 = vector.broadcast %cst_86 : f32 to vector<8x128xf32>
      %c0_87 = arith.constant 0 : index
      %c0_88 = arith.constant 0 : index
      %242 = vector.load %arg10[%c0_87, %c0_88] : memref<8x128xf32, #tpu.memory_space<vmem>>, vector<8x128xf32>
      tpu.vector_store %arg10[%c0_87, %c0_88], %241 {strides = array<i32>} : memref<8x128xf32, #tpu.memory_space<vmem>>, vector<8x128xf32>,
      %cst_89 = arith.constant 0.000000e+00 : f32
      %243 = vector.broadcast %cst_89 : f32 to vector<8x128xf32>
      %c0_90 = arith.constant 0 : index
      %c0_91 = arith.constant 0 : index
      %244 = vector.load %arg11[%c0_90, %c0_91] : memref<8x128xf32, #tpu.memory_space<vmem>>, vector<8x128xf32>
      tpu.vector_store %arg11[%c0_90, %c0_91], %243 {strides = array<i32>} : memref<8x128xf32, #tpu.memory_space<vmem>>, vector<8x128xf32>,
    } else {
    }
    %c0 = arith.constant 0 : index
    %c0_1 = arith.constant 0 : index
    %c0_2 = arith.constant 0 : index
    %3 = vector.load %arg2[%c0, %c0_1, %c0_2] : memref<1x64x16xbf16, #tpu.memory_space<vmem>>, vector<1x64x16xbf16>
    %4 = vector.shape_cast %3 : vector<1x64x16xbf16> to vector<64x16xbf16>
    %c0_3 = arith.constant 0 : index
    %c0_4 = arith.constant 0 : index
    %5 = vector.load %arg3[%c0_3, %c0_4] : memref<16x512xbf16, #tpu.memory_space<vmem>>, vector<16x512xbf16>
    %cst = arith.constant dense<0.000000e+00> : vector<64x512xf32>
    %6 = tpu.matmul %4, %5, %cst {dimension_numbers = #tpu.dot_dimension_numbers<[1], [0], [0], [1], [0, 0, 1, 1], [], []>} : vector<64x16xbf16>, vector<16x512xbf16>, vector<64x512xf32> -> vector<64x512xf32>
    %c0_5 = arith.constant 0 : index
    %c0_6 = arith.constant 0 : index
    %7 = vector.load %arg5[%c0_5, %c0_6] : memref<1x512xf32, #tpu.memory_space<vmem>>, vector<1x512xf32>
    %8 = vector.broadcast %7 : vector<1x512xf32> to vector<64x512xf32>
    %9 = arith.addf %6, %8 : vector<64x512xf32>
    %c0_7 = arith.constant 0 : index
    %c0_8 = arith.constant 0 : index
    %10 = vector.load %arg9[%c0_7, %c0_8] : memref<64x512xf32, #tpu.memory_space<vmem>>, vector<64x512xf32>
    tpu.vector_store %arg9[%c0_7, %c0_8], %9 {strides = array<i32>} : memref<64x512xf32, #tpu.memory_space<vmem>>, vector<64x512xf32>,
    %c0_9 = arith.constant 0 : index
    %c0_10 = arith.constant 0 : index
    %11 = vector.load %arg10[%c0_9, %c0_10] : memref<8x128xf32, #tpu.memory_space<vmem>>, vector<8x128xf32>
    %c0_11 = arith.constant 0 : index
    %c0_12 = arith.constant 0 : index
    %12 = vector.load %arg11[%c0_11, %c0_12] : memref<8x128xf32, #tpu.memory_space<vmem>>, vector<8x128xf32>
    %c0_i32_13 = arith.constant 0 : i32
    %c8_i32 = arith.constant 8 : i32
    %13 = arith.muli %c0_i32_13, %c8_i32 : i32
    %14 = tpu.assume_multiple %13, 8 : i32
    %15 = arith.index_cast %14 : i32 to index
    %c0_14 = arith.constant 0 : index
    %16 = vector.load %arg9[%15, %c0_14] : memref<64x512xf32, #tpu.memory_space<vmem>>, vector<8x512xf32>
    %17 = arith.truncf %11 : vector<8x128xf32> to vector<8x128xbf16>
    %c0_15 = arith.constant 0 : index
    %c0_16 = arith.constant 0 : index
    %18 = vector.load %arg4[%c0_15, %c0_16] : memref<128x512xbf16, #tpu.memory_space<vmem>>, vector<128x512xbf16>
    %cst_17 = arith.constant dense<0.000000e+00> : vector<8x512xf32>
    %19 = tpu.matmul %17, %18, %cst_17 {dimension_numbers = #tpu.dot_dimension_numbers<[1], [0], [0], [1], [0, 0, 1, 1], [], []>} : vector<8x128xbf16>, vector<128x512xbf16>, vector<8x512xf32> -> vector<8x512xf32>
    %20 = arith.addf %16, %19 : vector<8x512xf32>
    %21 = vector.extract_strided_slice %20 {offsets = [0, 0], sizes = [8, 384], strides = [1, 1]} : vector<8x512xf32> to vector<8x384xf32>
    %22 = arith.negf %21 : vector<8x384xf32>
    %23 = math.exp %22 : vector<8x384xf32>
    %cst_18 = arith.constant 1.000000e+00 : f32
    %24 = vector.broadcast %cst_18 : f32 to vector<8x384xf32>
    %25 = arith.addf %24, %23 : vector<8x384xf32>
    %26 = arith.divf %24, %25 : vector<8x384xf32>
    %27 = vector.extract_strided_slice %20 {offsets = [0, 384], sizes = [8, 128], strides = [1, 1]} : vector<8x512xf32> to vector<8x128xf32>
    %28 = math.tanh %27 : vector<8x128xf32>
    %29 = vector.extract_strided_slice %26 {offsets = [0, 0], sizes = [8, 128], strides = [1, 1]} : vector<8x384xf32> to vector<8x128xf32>
    %30 = vector.extract_strided_slice %26 {offsets = [0, 128], sizes = [8, 128], strides = [1, 1]} : vector<8x384xf32> to vector<8x128xf32>
    %31 = vector.extract_strided_slice %26 {offsets = [0, 256], sizes = [8, 128], strides = [1, 1]} : vector<8x384xf32> to vector<8x128xf32>
    %32 = arith.mulf %30, %12 : vector<8x128xf32>
    %33 = arith.mulf %29, %28 : vector<8x128xf32>
    %34 = arith.addf %32, %33 : vector<8x128xf32>
    %35 = math.tanh %34 : vector<8x128xf32>
    %36 = arith.mulf %31, %35 : vector<8x128xf32>
    %37 = arith.index_cast %c0_i32_13 : i32 to index
    %c0_19 = arith.constant 0 : index
    %c0_20 = arith.constant 0 : index
    %38 = vector.load %arg6[%37, %c0_19, %c0_20] : memref<8x8x128xf32, #tpu.memory_space<vmem>>, vector<1x8x128xf32>
    %39 = vector.shape_cast %38 : vector<1x8x128xf32> to vector<8x128xf32>
    %40 = vector.shape_cast %36 : vector<8x128xf32> to vector<1x8x128xf32>
    tpu.vector_store %arg6[%37, %c0_19, %c0_20], %40 {strides = array<i32>} : memref<8x8x128xf32, #tpu.memory_space<vmem>>, vector<1x8x128xf32>,
    %c1_i32 = arith.constant 1 : i32
    %c8_i32_21 = arith.constant 8 : i32
    %41 = arith.muli %c1_i32, %c8_i32_21 : i32
    %42 = tpu.assume_multiple %41, 8 : i32
    %43 = arith.index_cast %42 : i32 to index
    %c0_22 = arith.constant 0 : index
    %44 = vector.load %arg9[%43, %c0_22] : memref<64x512xf32, #tpu.memory_space<vmem>>, vector<8x512xf32>
    %45 = arith.truncf %36 : vector<8x128xf32> to vector<8x128xbf16>
    %c0_23 = arith.constant 0 : index
    %c0_24 = arith.constant 0 : index
    %46 = vector.load %arg4[%c0_23, %c0_24] : memref<128x512xbf16, #tpu.memory_space<vmem>>, vector<128x512xbf16>
    %cst_25 = arith.constant dense<0.000000e+00> : vector<8x512xf32>
    %47 = tpu.matmul %45, %46, %cst_25 {dimension_numbers = #tpu.dot_dimension_numbers<[1], [0], [0], [1], [0, 0, 1, 1], [], []>} : vector<8x128xbf16>, vector<128x512xbf16>, vector<8x512xf32> -> vector<8x512xf32>
    %48 = arith.addf %44, %47 : vector<8x512xf32>
    %49 = vector.extract_strided_slice %48 {offsets = [0, 0], sizes = [8, 384], strides = [1, 1]} : vector<8x512xf32> to vector<8x384xf32>
    %50 = arith.negf %49 : vector<8x384xf32>
    %51 = math.exp %50 : vector<8x384xf32>
    %cst_26 = arith.constant 1.000000e+00 : f32
    %52 = vector.broadcast %cst_26 : f32 to vector<8x384xf32>
    %53 = arith.addf %52, %51 : vector<8x384xf32>
    %54 = arith.divf %52, %53 : vector<8x384xf32>
    %55 = vector.extract_strided_slice %48 {offsets = [0, 384], sizes = [8, 128], strides = [1, 1]} : vector<8x512xf32> to vector<8x128xf32>
    %56 = math.tanh %55 : vector<8x128xf32>
    %57 = vector.extract_strided_slice %54 {offsets = [0, 0], sizes = [8, 128], strides = [1, 1]} : vector<8x384xf32> to vector<8x128xf32>
    %58 = vector.extract_strided_slice %54 {offsets = [0, 128], sizes = [8, 128], strides = [1, 1]} : vector<8x384xf32> to vector<8x128xf32>
    %59 = vector.extract_strided_slice %54 {offsets = [0, 256], sizes = [8, 128], strides = [1, 1]} : vector<8x384xf32> to vector<8x128xf32>
    %60 = arith.mulf %58, %34 : vector<8x128xf32>
    %61 = arith.mulf %57, %56 : vector<8x128xf32>
    %62 = arith.addf %60, %61 : vector<8x128xf32>
    %63 = math.tanh %62 : vector<8x128xf32>
    %64 = arith.mulf %59, %63 : vector<8x128xf32>
    %65 = arith.index_cast %c1_i32 : i32 to index
    %c0_27 = arith.constant 0 : index
    %c0_28 = arith.constant 0 : index
    %66 = vector.load %arg6[%65, %c0_27, %c0_28] : memref<8x8x128xf32, #tpu.memory_space<vmem>>, vector<1x8x128xf32>
    %67 = vector.shape_cast %66 : vector<1x8x128xf32> to vector<8x128xf32>
    %68 = vector.shape_cast %64 : vector<8x128xf32> to vector<1x8x128xf32>
    tpu.vector_store %arg6[%65, %c0_27, %c0_28], %68 {strides = array<i32>} : memref<8x8x128xf32, #tpu.memory_space<vmem>>, vector<1x8x128xf32>,
    %c2_i32 = arith.constant 2 : i32
    %c8_i32_29 = arith.constant 8 : i32
    %69 = arith.muli %c2_i32, %c8_i32_29 : i32
    %70 = tpu.assume_multiple %69, 8 : i32
    %71 = arith.index_cast %70 : i32 to index
    %c0_30 = arith.constant 0 : index
    %72 = vector.load %arg9[%71, %c0_30] : memref<64x512xf32, #tpu.memory_space<vmem>>, vector<8x512xf32>
    %73 = arith.truncf %64 : vector<8x128xf32> to vector<8x128xbf16>
    %c0_31 = arith.constant 0 : index
    %c0_32 = arith.constant 0 : index
    %74 = vector.load %arg4[%c0_31, %c0_32] : memref<128x512xbf16, #tpu.memory_space<vmem>>, vector<128x512xbf16>
    %cst_33 = arith.constant dense<0.000000e+00> : vector<8x512xf32>
    %75 = tpu.matmul %73, %74, %cst_33 {dimension_numbers = #tpu.dot_dimension_numbers<[1], [0], [0], [1], [0, 0, 1, 1], [], []>} : vector<8x128xbf16>, vector<128x512xbf16>, vector<8x512xf32> -> vector<8x512xf32>
    %76 = arith.addf %72, %75 : vector<8x512xf32>
    %77 = vector.extract_strided_slice %76 {offsets = [0, 0], sizes = [8, 384], strides = [1, 1]} : vector<8x512xf32> to vector<8x384xf32>
    %78 = arith.negf %77 : vector<8x384xf32>
    %79 = math.exp %78 : vector<8x384xf32>
    %cst_34 = arith.constant 1.000000e+00 : f32
    %80 = vector.broadcast %cst_34 : f32 to vector<8x384xf32>
    %81 = arith.addf %80, %79 : vector<8x384xf32>
    %82 = arith.divf %80, %81 : vector<8x384xf32>
    %83 = vector.extract_strided_slice %76 {offsets = [0, 384], sizes = [8, 128], strides = [1, 1]} : vector<8x512xf32> to vector<8x128xf32>
    %84 = math.tanh %83 : vector<8x128xf32>
    %85 = vector.extract_strided_slice %82 {offsets = [0, 0], sizes = [8, 128], strides = [1, 1]} : vector<8x384xf32> to vector<8x128xf32>
    %86 = vector.extract_strided_slice %82 {offsets = [0, 128], sizes = [8, 128], strides = [1, 1]} : vector<8x384xf32> to vector<8x128xf32>
    %87 = vector.extract_strided_slice %82 {offsets = [0, 256], sizes = [8, 128], strides = [1, 1]} : vector<8x384xf32> to vector<8x128xf32>
    %88 = arith.mulf %86, %62 : vector<8x128xf32>
    %89 = arith.mulf %85, %84 : vector<8x128xf32>
    %90 = arith.addf %88, %89 : vector<8x128xf32>
    %91 = math.tanh %90 : vector<8x128xf32>
    %92 = arith.mulf %87, %91 : vector<8x128xf32>
    %93 = arith.index_cast %c2_i32 : i32 to index
    %c0_35 = arith.constant 0 : index
    %c0_36 = arith.constant 0 : index
    %94 = vector.load %arg6[%93, %c0_35, %c0_36] : memref<8x8x128xf32, #tpu.memory_space<vmem>>, vector<1x8x128xf32>
    %95 = vector.shape_cast %94 : vector<1x8x128xf32> to vector<8x128xf32>
    %96 = vector.shape_cast %92 : vector<8x128xf32> to vector<1x8x128xf32>
    tpu.vector_store %arg6[%93, %c0_35, %c0_36], %96 {strides = array<i32>} : memref<8x8x128xf32, #tpu.memory_space<vmem>>, vector<1x8x128xf32>,
    %c3_i32 = arith.constant 3 : i32
    %c8_i32_37 = arith.constant 8 : i32
    %97 = arith.muli %c3_i32, %c8_i32_37 : i32
    %98 = tpu.assume_multiple %97, 8 : i32
    %99 = arith.index_cast %98 : i32 to index
    %c0_38 = arith.constant 0 : index
    %100 = vector.load %arg9[%99, %c0_38] : memref<64x512xf32, #tpu.memory_space<vmem>>, vector<8x512xf32>
    %101 = arith.truncf %92 : vector<8x128xf32> to vector<8x128xbf16>
    %c0_39 = arith.constant 0 : index
    %c0_40 = arith.constant 0 : index
    %102 = vector.load %arg4[%c0_39, %c0_40] : memref<128x512xbf16, #tpu.memory_space<vmem>>, vector<128x512xbf16>
    %cst_41 = arith.constant dense<0.000000e+00> : vector<8x512xf32>
    %103 = tpu.matmul %101, %102, %cst_41 {dimension_numbers = #tpu.dot_dimension_numbers<[1], [0], [0], [1], [0, 0, 1, 1], [], []>} : vector<8x128xbf16>, vector<128x512xbf16>, vector<8x512xf32> -> vector<8x512xf32>
    %104 = arith.addf %100, %103 : vector<8x512xf32>
    %105 = vector.extract_strided_slice %104 {offsets = [0, 0], sizes = [8, 384], strides = [1, 1]} : vector<8x512xf32> to vector<8x384xf32>
    %106 = arith.negf %105 : vector<8x384xf32>
    %107 = math.exp %106 : vector<8x384xf32>
    %cst_42 = arith.constant 1.000000e+00 : f32
    %108 = vector.broadcast %cst_42 : f32 to vector<8x384xf32>
    %109 = arith.addf %108, %107 : vector<8x384xf32>
    %110 = arith.divf %108, %109 : vector<8x384xf32>
    %111 = vector.extract_strided_slice %104 {offsets = [0, 384], sizes = [8, 128], strides = [1, 1]} : vector<8x512xf32> to vector<8x128xf32>
    %112 = math.tanh %111 : vector<8x128xf32>
    %113 = vector.extract_strided_slice %110 {offsets = [0, 0], sizes = [8, 128], strides = [1, 1]} : vector<8x384xf32> to vector<8x128xf32>
    %114 = vector.extract_strided_slice %110 {offsets = [0, 128], sizes = [8, 128], strides = [1, 1]} : vector<8x384xf32> to vector<8x128xf32>
    %115 = vector.extract_strided_slice %110 {offsets = [0, 256], sizes = [8, 128], strides = [1, 1]} : vector<8x384xf32> to vector<8x128xf32>
    %116 = arith.mulf %114, %90 : vector<8x128xf32>
    %117 = arith.mulf %113, %112 : vector<8x128xf32>
    %118 = arith.addf %116, %117 : vector<8x128xf32>
    %119 = math.tanh %118 : vector<8x128xf32>
    %120 = arith.mulf %115, %119 : vector<8x128xf32>
    %121 = arith.index_cast %c3_i32 : i32 to index
    %c0_43 = arith.constant 0 : index
    %c0_44 = arith.constant 0 : index
    %122 = vector.load %arg6[%121, %c0_43, %c0_44] : memref<8x8x128xf32, #tpu.memory_space<vmem>>, vector<1x8x128xf32>
    %123 = vector.shape_cast %122 : vector<1x8x128xf32> to vector<8x128xf32>
    %124 = vector.shape_cast %120 : vector<8x128xf32> to vector<1x8x128xf32>
    tpu.vector_store %arg6[%121, %c0_43, %c0_44], %124 {strides = array<i32>} : memref<8x8x128xf32, #tpu.memory_space<vmem>>, vector<1x8x128xf32>,
    %c4_i32 = arith.constant 4 : i32
    %c8_i32_45 = arith.constant 8 : i32
    %125 = arith.muli %c4_i32, %c8_i32_45 : i32
    %126 = tpu.assume_multiple %125, 8 : i32
    %127 = arith.index_cast %126 : i32 to index
    %c0_46 = arith.constant 0 : index
    %128 = vector.load %arg9[%127, %c0_46] : memref<64x512xf32, #tpu.memory_space<vmem>>, vector<8x512xf32>
    %129 = arith.truncf %120 : vector<8x128xf32> to vector<8x128xbf16>
    %c0_47 = arith.constant 0 : index
    %c0_48 = arith.constant 0 : index
    %130 = vector.load %arg4[%c0_47, %c0_48] : memref<128x512xbf16, #tpu.memory_space<vmem>>, vector<128x512xbf16>
    %cst_49 = arith.constant dense<0.000000e+00> : vector<8x512xf32>
    %131 = tpu.matmul %129, %130, %cst_49 {dimension_numbers = #tpu.dot_dimension_numbers<[1], [0], [0], [1], [0, 0, 1, 1], [], []>} : vector<8x128xbf16>, vector<128x512xbf16>, vector<8x512xf32> -> vector<8x512xf32>
    %132 = arith.addf %128, %131 : vector<8x512xf32>
    %133 = vector.extract_strided_slice %132 {offsets = [0, 0], sizes = [8, 384], strides = [1, 1]} : vector<8x512xf32> to vector<8x384xf32>
    %134 = arith.negf %133 : vector<8x384xf32>
    %135 = math.exp %134 : vector<8x384xf32>
    %cst_50 = arith.constant 1.000000e+00 : f32
    %136 = vector.broadcast %cst_50 : f32 to vector<8x384xf32>
    %137 = arith.addf %136, %135 : vector<8x384xf32>
    %138 = arith.divf %136, %137 : vector<8x384xf32>
    %139 = vector.extract_strided_slice %132 {offsets = [0, 384], sizes = [8, 128], strides = [1, 1]} : vector<8x512xf32> to vector<8x128xf32>
    %140 = math.tanh %139 : vector<8x128xf32>
    %141 = vector.extract_strided_slice %138 {offsets = [0, 0], sizes = [8, 128], strides = [1, 1]} : vector<8x384xf32> to vector<8x128xf32>
    %142 = vector.extract_strided_slice %138 {offsets = [0, 128], sizes = [8, 128], strides = [1, 1]} : vector<8x384xf32> to vector<8x128xf32>
    %143 = vector.extract_strided_slice %138 {offsets = [0, 256], sizes = [8, 128], strides = [1, 1]} : vector<8x384xf32> to vector<8x128xf32>
    %144 = arith.mulf %142, %118 : vector<8x128xf32>
    %145 = arith.mulf %141, %140 : vector<8x128xf32>
    %146 = arith.addf %144, %145 : vector<8x128xf32>
    %147 = math.tanh %146 : vector<8x128xf32>
    %148 = arith.mulf %143, %147 : vector<8x128xf32>
    %149 = arith.index_cast %c4_i32 : i32 to index
    %c0_51 = arith.constant 0 : index
    %c0_52 = arith.constant 0 : index
    %150 = vector.load %arg6[%149, %c0_51, %c0_52] : memref<8x8x128xf32, #tpu.memory_space<vmem>>, vector<1x8x128xf32>
    %151 = vector.shape_cast %150 : vector<1x8x128xf32> to vector<8x128xf32>
    %152 = vector.shape_cast %148 : vector<8x128xf32> to vector<1x8x128xf32>
    tpu.vector_store %arg6[%149, %c0_51, %c0_52], %152 {strides = array<i32>} : memref<8x8x128xf32, #tpu.memory_space<vmem>>, vector<1x8x128xf32>,
    %c5_i32 = arith.constant 5 : i32
    %c8_i32_53 = arith.constant 8 : i32
    %153 = arith.muli %c5_i32, %c8_i32_53 : i32
    %154 = tpu.assume_multiple %153, 8 : i32
    %155 = arith.index_cast %154 : i32 to index
    %c0_54 = arith.constant 0 : index
    %156 = vector.load %arg9[%155, %c0_54] : memref<64x512xf32, #tpu.memory_space<vmem>>, vector<8x512xf32>
    %157 = arith.truncf %148 : vector<8x128xf32> to vector<8x128xbf16>
    %c0_55 = arith.constant 0 : index
    %c0_56 = arith.constant 0 : index
    %158 = vector.load %arg4[%c0_55, %c0_56] : memref<128x512xbf16, #tpu.memory_space<vmem>>, vector<128x512xbf16>
    %cst_57 = arith.constant dense<0.000000e+00> : vector<8x512xf32>
    %159 = tpu.matmul %157, %158, %cst_57 {dimension_numbers = #tpu.dot_dimension_numbers<[1], [0], [0], [1], [0, 0, 1, 1], [], []>} : vector<8x128xbf16>, vector<128x512xbf16>, vector<8x512xf32> -> vector<8x512xf32>
    %160 = arith.addf %156, %159 : vector<8x512xf32>
    %161 = vector.extract_strided_slice %160 {offsets = [0, 0], sizes = [8, 384], strides = [1, 1]} : vector<8x512xf32> to vector<8x384xf32>
    %162 = arith.negf %161 : vector<8x384xf32>
    %163 = math.exp %162 : vector<8x384xf32>
    %cst_58 = arith.constant 1.000000e+00 : f32
    %164 = vector.broadcast %cst_58 : f32 to vector<8x384xf32>
    %165 = arith.addf %164, %163 : vector<8x384xf32>
    %166 = arith.divf %164, %165 : vector<8x384xf32>
    %167 = vector.extract_strided_slice %160 {offsets = [0, 384], sizes = [8, 128], strides = [1, 1]} : vector<8x512xf32> to vector<8x128xf32>
    %168 = math.tanh %167 : vector<8x128xf32>
    %169 = vector.extract_strided_slice %166 {offsets = [0, 0], sizes = [8, 128], strides = [1, 1]} : vector<8x384xf32> to vector<8x128xf32>
    %170 = vector.extract_strided_slice %166 {offsets = [0, 128], sizes = [8, 128], strides = [1, 1]} : vector<8x384xf32> to vector<8x128xf32>
    %171 = vector.extract_strided_slice %166 {offsets = [0, 256], sizes = [8, 128], strides = [1, 1]} : vector<8x384xf32> to vector<8x128xf32>
    %172 = arith.mulf %170, %146 : vector<8x128xf32>
    %173 = arith.mulf %169, %168 : vector<8x128xf32>
    %174 = arith.addf %172, %173 : vector<8x128xf32>
    %175 = math.tanh %174 : vector<8x128xf32>
    %176 = arith.mulf %171, %175 : vector<8x128xf32>
    %177 = arith.index_cast %c5_i32 : i32 to index
    %c0_59 = arith.constant 0 : index
    %c0_60 = arith.constant 0 : index
    %178 = vector.load %arg6[%177, %c0_59, %c0_60] : memref<8x8x128xf32, #tpu.memory_space<vmem>>, vector<1x8x128xf32>
    %179 = vector.shape_cast %178 : vector<1x8x128xf32> to vector<8x128xf32>
    %180 = vector.shape_cast %176 : vector<8x128xf32> to vector<1x8x128xf32>
    tpu.vector_store %arg6[%177, %c0_59, %c0_60], %180 {strides = array<i32>} : memref<8x8x128xf32, #tpu.memory_space<vmem>>, vector<1x8x128xf32>,
    %c6_i32 = arith.constant 6 : i32
    %c8_i32_61 = arith.constant 8 : i32
    %181 = arith.muli %c6_i32, %c8_i32_61 : i32
    %182 = tpu.assume_multiple %181, 8 : i32
    %183 = arith.index_cast %182 : i32 to index
    %c0_62 = arith.constant 0 : index
    %184 = vector.load %arg9[%183, %c0_62] : memref<64x512xf32, #tpu.memory_space<vmem>>, vector<8x512xf32>
    %185 = arith.truncf %176 : vector<8x128xf32> to vector<8x128xbf16>
    %c0_63 = arith.constant 0 : index
    %c0_64 = arith.constant 0 : index
    %186 = vector.load %arg4[%c0_63, %c0_64] : memref<128x512xbf16, #tpu.memory_space<vmem>>, vector<128x512xbf16>
    %cst_65 = arith.constant dense<0.000000e+00> : vector<8x512xf32>
    %187 = tpu.matmul %185, %186, %cst_65 {dimension_numbers = #tpu.dot_dimension_numbers<[1], [0], [0], [1], [0, 0, 1, 1], [], []>} : vector<8x128xbf16>, vector<128x512xbf16>, vector<8x512xf32> -> vector<8x512xf32>
    %188 = arith.addf %184, %187 : vector<8x512xf32>
    %189 = vector.extract_strided_slice %188 {offsets = [0, 0], sizes = [8, 384], strides = [1, 1]} : vector<8x512xf32> to vector<8x384xf32>
    %190 = arith.negf %189 : vector<8x384xf32>
    %191 = math.exp %190 : vector<8x384xf32>
    %cst_66 = arith.constant 1.000000e+00 : f32
    %192 = vector.broadcast %cst_66 : f32 to vector<8x384xf32>
    %193 = arith.addf %192, %191 : vector<8x384xf32>
    %194 = arith.divf %192, %193 : vector<8x384xf32>
    %195 = vector.extract_strided_slice %188 {offsets = [0, 384], sizes = [8, 128], strides = [1, 1]} : vector<8x512xf32> to vector<8x128xf32>
    %196 = math.tanh %195 : vector<8x128xf32>
    %197 = vector.extract_strided_slice %194 {offsets = [0, 0], sizes = [8, 128], strides = [1, 1]} : vector<8x384xf32> to vector<8x128xf32>
    %198 = vector.extract_strided_slice %194 {offsets = [0, 128], sizes = [8, 128], strides = [1, 1]} : vector<8x384xf32> to vector<8x128xf32>
    %199 = vector.extract_strided_slice %194 {offsets = [0, 256], sizes = [8, 128], strides = [1, 1]} : vector<8x384xf32> to vector<8x128xf32>
    %200 = arith.mulf %198, %174 : vector<8x128xf32>
    %201 = arith.mulf %197, %196 : vector<8x128xf32>
    %202 = arith.addf %200, %201 : vector<8x128xf32>
    %203 = math.tanh %202 : vector<8x128xf32>
    %204 = arith.mulf %199, %203 : vector<8x128xf32>
    %205 = arith.index_cast %c6_i32 : i32 to index
    %c0_67 = arith.constant 0 : index
    %c0_68 = arith.constant 0 : index
    %206 = vector.load %arg6[%205, %c0_67, %c0_68] : memref<8x8x128xf32, #tpu.memory_space<vmem>>, vector<1x8x128xf32>
    %207 = vector.shape_cast %206 : vector<1x8x128xf32> to vector<8x128xf32>
    %208 = vector.shape_cast %204 : vector<8x128xf32> to vector<1x8x128xf32>
    tpu.vector_store %arg6[%205, %c0_67, %c0_68], %208 {strides = array<i32>} : memref<8x8x128xf32, #tpu.memory_space<vmem>>, vector<1x8x128xf32>,
    %c7_i32 = arith.constant 7 : i32
    %c8_i32_69 = arith.constant 8 : i32
    %209 = arith.muli %c7_i32, %c8_i32_69 : i32
    %210 = tpu.assume_multiple %209, 8 : i32
    %211 = arith.index_cast %210 : i32 to index
    %c0_70 = arith.constant 0 : index
    %212 = vector.load %arg9[%211, %c0_70] : memref<64x512xf32, #tpu.memory_space<vmem>>, vector<8x512xf32>
    %213 = arith.truncf %204 : vector<8x128xf32> to vector<8x128xbf16>
    %c0_71 = arith.constant 0 : index
    %c0_72 = arith.constant 0 : index
    %214 = vector.load %arg4[%c0_71, %c0_72] : memref<128x512xbf16, #tpu.memory_space<vmem>>, vector<128x512xbf16>
    %cst_73 = arith.constant dense<0.000000e+00> : vector<8x512xf32>
    %215 = tpu.matmul %213, %214, %cst_73 {dimension_numbers = #tpu.dot_dimension_numbers<[1], [0], [0], [1], [0, 0, 1, 1], [], []>} : vector<8x128xbf16>, vector<128x512xbf16>, vector<8x512xf32> -> vector<8x512xf32>
    %216 = arith.addf %212, %215 : vector<8x512xf32>
    %217 = vector.extract_strided_slice %216 {offsets = [0, 0], sizes = [8, 384], strides = [1, 1]} : vector<8x512xf32> to vector<8x384xf32>
    %218 = arith.negf %217 : vector<8x384xf32>
    %219 = math.exp %218 : vector<8x384xf32>
    %cst_74 = arith.constant 1.000000e+00 : f32
    %220 = vector.broadcast %cst_74 : f32 to vector<8x384xf32>
    %221 = arith.addf %220, %219 : vector<8x384xf32>
    %222 = arith.divf %220, %221 : vector<8x384xf32>
    %223 = vector.extract_strided_slice %216 {offsets = [0, 384], sizes = [8, 128], strides = [1, 1]} : vector<8x512xf32> to vector<8x128xf32>
    %224 = math.tanh %223 : vector<8x128xf32>
    %225 = vector.extract_strided_slice %222 {offsets = [0, 0], sizes = [8, 128], strides = [1, 1]} : vector<8x384xf32> to vector<8x128xf32>
    %226 = vector.extract_strided_slice %222 {offsets = [0, 128], sizes = [8, 128], strides = [1, 1]} : vector<8x384xf32> to vector<8x128xf32>
    %227 = vector.extract_strided_slice %222 {offsets = [0, 256], sizes = [8, 128], strides = [1, 1]} : vector<8x384xf32> to vector<8x128xf32>
    %228 = arith.mulf %226, %202 : vector<8x128xf32>
    %229 = arith.mulf %225, %224 : vector<8x128xf32>
    %230 = arith.addf %228, %229 : vector<8x128xf32>
    %231 = math.tanh %230 : vector<8x128xf32>
    %232 = arith.mulf %227, %231 : vector<8x128xf32>
    %233 = arith.index_cast %c7_i32 : i32 to index
    %c0_75 = arith.constant 0 : index
    %c0_76 = arith.constant 0 : index
    %234 = vector.load %arg6[%233, %c0_75, %c0_76] : memref<8x8x128xf32, #tpu.memory_space<vmem>>, vector<1x8x128xf32>
    %235 = vector.shape_cast %234 : vector<1x8x128xf32> to vector<8x128xf32>
    %236 = vector.shape_cast %232 : vector<8x128xf32> to vector<1x8x128xf32>
    tpu.vector_store %arg6[%233, %c0_75, %c0_76], %236 {strides = array<i32>} : memref<8x8x128xf32, #tpu.memory_space<vmem>>, vector<1x8x128xf32>,
    %c8_i32_77 = arith.constant 8 : i32
    %c0_78 = arith.constant 0 : index
    %c0_79 = arith.constant 0 : index
    %237 = vector.load %arg10[%c0_78, %c0_79] : memref<8x128xf32, #tpu.memory_space<vmem>>, vector<8x128xf32>
    tpu.vector_store %arg10[%c0_78, %c0_79], %232 {strides = array<i32>} : memref<8x128xf32, #tpu.memory_space<vmem>>, vector<8x128xf32>,
    %c0_80 = arith.constant 0 : index
    %c0_81 = arith.constant 0 : index
    %238 = vector.load %arg11[%c0_80, %c0_81] : memref<8x128xf32, #tpu.memory_space<vmem>>, vector<8x128xf32>
    tpu.vector_store %arg11[%c0_80, %c0_81], %230 {strides = array<i32>} : memref<8x128xf32, #tpu.memory_space<vmem>>, vector<8x128xf32>,
    %c0_82 = arith.constant 0 : index
    %c0_83 = arith.constant 0 : index
    %239 = vector.load %arg7[%c0_82, %c0_83] : memref<8x128xf32, #tpu.memory_space<vmem>>, vector<8x128xf32>
    tpu.vector_store %arg7[%c0_82, %c0_83], %232 {strides = array<i32>} : memref<8x128xf32, #tpu.memory_space<vmem>>, vector<8x128xf32>,
    %c0_84 = arith.constant 0 : index
    %c0_85 = arith.constant 0 : index
    %240 = vector.load %arg8[%c0_84, %c0_85] : memref<8x128xf32, #tpu.memory_space<vmem>>, vector<8x128xf32>
    tpu.vector_store %arg8[%c0_84, %c0_85], %230 {strides = array<i32>} : memref<8x128xf32, #tpu.memory_space<vmem>>, vector<8x128xf32>,
    return
  }
  func.func @transform_0(%arg0: i32, %arg1: i32) -> (i32, i32, i32) {
    %c0_i32 = arith.constant 0 : i32
    %c0_i32_0 = arith.constant 0 : i32
    return %arg0, %arg1, %c0_i32 : i32, i32, i32
  }
  func.func @transform_1(%arg0: i32, %arg1: i32) -> (i32, i32) {
    %c0_i32 = arith.constant 0 : i32
    %c0_i32_0 = arith.constant 0 : i32
    %c0_i32_1 = arith.constant 0 : i32
    return %c0_i32, %c0_i32_0 : i32, i32
  }
  func.func @transform_2(%arg0: i32, %arg1: i32) -> (i32, i32) {
    %c0_i32 = arith.constant 0 : i32
    %c0_i32_0 = arith.constant 0 : i32
    %c0_i32_1 = arith.constant 0 : i32
    return %c0_i32, %c0_i32_0 : i32, i32
  }
  func.func @transform_3(%arg0: i32, %arg1: i32) -> (i32, i32) {
    %c0_i32 = arith.constant 0 : i32
    %c0_i32_0 = arith.constant 0 : i32
    %c0_i32_1 = arith.constant 0 : i32
    return %c0_i32, %c0_i32_0 : i32, i32
  }
  func.func @transform_4(%arg0: i32, %arg1: i32) -> (i32, i32, i32) {
    %c0_i32 = arith.constant 0 : i32
    %c0_i32_0 = arith.constant 0 : i32
    return %arg1, %arg0, %c0_i32 : i32, i32, i32
  }
  func.func @transform_5(%arg0: i32, %arg1: i32) -> (i32, i32) {
    %c0_i32 = arith.constant 0 : i32
    %c0_i32_0 = arith.constant 0 : i32
    return %arg0, %c0_i32 : i32, i32
  }
  func.func @transform_6(%arg0: i32, %arg1: i32) -> (i32, i32) {
    %c0_i32 = arith.constant 0 : i32
    %c0_i32_0 = arith.constant 0 : i32
    return %arg0, %c0_i32 : i32, i32
  }
}

</mosaic_0001>

<bundles_post_ra>
// kernel: encoder_forward.1
= control target key start
LH: loop header
LB: loop body
LE: loop exit
PB: predicated region body
PF: predicated region fallthrough
CT: control target
= control target key end

     0   :  { %v4200_v1 = vmov 0   ;;  %vm101_vm0 = vcmask 130048   ;;  %v3352_v41 = vmov 0.0|0.0   ;;  %v41_v42 = vlaneseq  ;;  %s4193_s1 = inlined_call_operand.vmem [shape: bf16[16,512], index: 1, kind: input, shape index: {}]   ;;  %s4194_s0 = inlined_call_operand.vmem [shape: bf16[1,64,16], index: 0, kind: input, shape index: {}]   ;;  %s4195_s2 = inlined_call_operand.vmem [shape: bf16[128,512], index: 2, kind: input, shape index: {}]   ;;  %s4196_s3 = inlined_call_operand.vmem [shape: f32[1,512], index: 3, kind: input, shape index: {}]   ;;  %s4197_s4 = inlined_call_operand.vmem [shape: f32[8,8,128], index: 4, kind: output, shape index: {0}]   ;;  %s4198_s6 = inlined_call_operand.vmem [shape: f32[8,128], index: 6, kind: output, shape index: {2}]   ;;  %s4199_s5 = inlined_call_operand.vmem [shape: f32[8,128], index: 5, kind: output, shape index: {1}]  }
   0x1   :  { %v3117_v0 = vld [vmem:[%s4193_s1 + $0x4] ss:$16 sps:$4 sm:$0xff]   ;;  %146 = vmatprep.mubr.bf16.mxu0 %v4200_v1  ;;  %219 = vmatprep.mubr.bf16.mxu1 %v4200_v1  ;;  %v3119_v2 = vld [vmem:[%s4193_s1 + $0xc] ss:$16 sps:$4 sm:$0xff]   ;;  %v3121_v3 = vld [vmem:[%s4193_s1] ss:$16 sps:$4 sm:$0xff]  }
   0x2   :  { %128 = vmatprep.subr.bf16.mxu0 %v3117_v0  ;;  %v3122_v4 = vld [vmem:[%s4193_s1 + $0x8] ss:$16 sps:$4 sm:$0xff]   ;;  %201 = vmatprep.subr.bf16.mxu1 %v3119_v2  ;;  %v3123_v5 = vld [vmem:[%s4194_s0] sm:$0xff]   ;;  %v3424_v9 = vld [vmem:[%s4195_s2 + $0xec] ss:$16 sps:$4 sm:$0xff]   ;;  %v42_v43 = vshrl.u32 %v41_v42, 7 }
   0x3   :  { %129 = vmatpush1.bf16.msra.mxu0 %v3121_v3  ;;  %202 = vmatpush1.bf16.msra.mxu1 %v3122_v4  ;;  %v3408_v6 = vld [vmem:[%s4195_s2 + $0xe0] ss:$16 sps:$4 sm:$0xff]   ;;  %v3413_v7 = vld [vmem:[%s4195_s2 + $0xe4] ss:$16 sps:$4 sm:$0xff]   ;;  %v3418_v8 = vld [vmem:[%s4195_s2 + $0xe8] ss:$16 sps:$4 sm:$0xff]  }
   0x4   :  { %494 = vmatprep.subr.bf16.mxu0 %v3413_v7  ;;  %v3431_v10 = vld [vmem:[%s4195_s2 + $0xc4] ss:$16 sps:$4 sm:$0xff]   ;;  %535 = vmatprep.subr.bf16.mxu1 %v3424_v9  ;;  %v3438_v11 = vld [vmem:[%s4195_s2 + $0xc0] ss:$16 sps:$4 sm:$0xff]   ;;  %v3443_v12 = vld [vmem:[%s4195_s2 + $0xcc] ss:$16 sps:$4 sm:$0xff]  }
   0x5   :  { %v3450_v13 = vld [vmem:[%s4195_s2 + $0xc8] ss:$16 sps:$4 sm:$0xff]   ;;  %v3461_v15 = vld [vmem:[%s4195_s2 + $0xa4] ss:$16 sps:$4 sm:$0xff]   ;;  %v3467_v16 = vld [vmem:[%s4195_s2 + $0xa0] ss:$16 sps:$4 sm:$0xff]  }
   0x6   :  { %2820 = vmatmul.mubr.msk.bf16.vlgmr.msra.gmra.mxu0 %vm101_vm0, %v3123_v5  ;;  %2824 = vmatmul.mubr.msk.bf16.vlgmr.msra.gmra.mxu1 %vm101_vm0, %v3123_v5  ;;  %v3136_v14 = vld [vmem:[%s4194_s0 + $0x8] sm:$0xff]   ;;  %v3484_v19 = vld [vmem:[%s4195_s2 + $0x84] ss:$16 sps:$4 sm:$0xff]   ;;  %v3498_v21 = vld [vmem:[%s4195_s2 + $0x80] ss:$16 sps:$4 sm:$0xff]   ;;  %v51_v44 = vsub.s32 2, %v42_v43 }
   0x7   :  { %495 = vmatpush1.bf16.msra.mxu0 %v3408_v6  ;;  %536 = vmatpush1.bf16.msra.mxu1 %v3418_v8  ;;  %v3472_v17 = vld [vmem:[%s4195_s2 + $0xac] ss:$16 sps:$4 sm:$0xff]   ;;  %v3479_v18 = vld [vmem:[%s4195_s2 + $0xa8] ss:$16 sps:$4 sm:$0xff]   ;;  %v3511_v23 = vld [vmem:[%s4195_s2 + $0x64] ss:$16 sps:$4 sm:$0xff]  }
   0x8   :  { %496 = vmatprep.subr.bf16.mxu0 %v3431_v10  ;;  %537 = vmatprep.subr.bf16.mxu1 %v3443_v12  ;;  %v3492_v20 = vld [vmem:[%s4195_s2 + $0x8c] ss:$16 sps:$4 sm:$0xff]   ;;  %v3506_v22 = vld [vmem:[%s4195_s2 + $0x88] ss:$16 sps:$4 sm:$0xff]   ;;  %v3149_v25 = vld [vmem:[%s4194_s0 + $0x10] sm:$0xff]   ;;  %v43_v45 = vsub.s32 0, %v42_v43 }
   0x9   :  { %156 = vmatprep.mubr.bf16.mxu0 %v4200_v1  ;;  %229 = vmatprep.mubr.bf16.mxu1 %v4200_v1  ;;  %v3518_v24 = vld [vmem:[%s4195_s2 + $0x6c] ss:$16 sps:$4 sm:$0xff]   ;;  %v3527_v26 = vld [vmem:[%s4195_s2 + $0x60] ss:$16 sps:$4 sm:$0xff]   ;;  %v3534_v27 = vld [vmem:[%s4195_s2 + $0x68] ss:$16 sps:$4 sm:$0xff]  }
   0xa   :  { %v3539_v28 = vld [vmem:[%s4195_s2 + $0x44] ss:$16 sps:$4 sm:$0xff]   ;;  %v3545_v29 = vld [vmem:[%s4195_s2 + $0x4c] ss:$16 sps:$4 sm:$0xff]   ;;  %v3552_v30 = vld [vmem:[%s4195_s2 + $0x40] ss:$16 sps:$4 sm:$0xff]  }
   0xb   :  { %497 = vmatpush1.bf16.msra.mxu0 %v3438_v11  ;;  %538 = vmatpush1.bf16.msra.mxu1 %v3450_v13  ;;  %v3558_v31 = vld [vmem:[%s4195_s2 + $0x48] ss:$16 sps:$4 sm:$0xff]   ;;  %v3569_v33 = vld [vmem:[%s4195_s2 + $0x24] ss:$16 sps:$4 sm:$0xff]   ;;  %v3576_v34 = vld [vmem:[%s4195_s2 + $0x20] ss:$16 sps:$4 sm:$0xff]  }
   0xc   :  { %498 = vmatprep.subr.bf16.mxu0 %v3461_v15  ;;  %539 = vmatprep.subr.bf16.mxu1 %v3472_v17  ;;  %v3162_v32 = vld [vmem:[%s4194_s0 + $0x18] sm:$0xff]   ;;  %v3591_v37 = vld [vmem:[%s4195_s2 + $0x4] ss:$16 sps:$4 sm:$0xff]   ;;  %v3605_v39 = vld [vmem:[%s4195_s2] ss:$16 sps:$4 sm:$0xff]   ;;  %v55_v46 = vsub.s32 3, %v42_v43 }
   0xd   :  { %v3581_v35 = vld [vmem:[%s4195_s2 + $0x2c] ss:$16 sps:$4 sm:$0xff]   ;;  %v3586_v36 = vld [vmem:[%s4195_s2 + $0x28] ss:$16 sps:$4 sm:$0xff]   ;;  %v39_v47 = vld [vmem:[%s4196_s3] sm:$0xf] }
   0xe   :  { %2821 = vmatmul.mubr.msk.bf16.gmra.mxu0 %vm101_vm0, %v3136_v14  ;;  %2825 = vmatmul.mubr.msk.bf16.gmra.mxu1 %vm101_vm0, %v3136_v14  ;;  %v3597_v38 = vld [vmem:[%s4195_s2 + $0xc] ss:$16 sps:$4 sm:$0xff]   ;;  %v3612_v40 = vld [vmem:[%s4195_s2 + $0x8] ss:$16 sps:$4 sm:$0xff]   ;;  %v3665_v50 = vrot.slane %v39_v47, %v51_v44  ;;  %v47_v51 = vsub.s32 1, %v42_v43  ;;  %v44_v54 = vrot.slane %v39_v47, %v43_v45  ;;  %v3671_v55 = vrot.slane %v39_v47, %v55_v46 }
   0xf   :  { %499 = vmatpush1.bf16.msra.mxu0 %v3467_v16  ;;  %166 = vmatprep.mubr.bf16.mxu0 %v4200_v1 }
  0x10   :  { %540 = vmatpush1.bf16.msra.mxu1 %v3479_v18  ;;  %500 = vmatprep.subr.bf16.mxu0 %v3484_v19  ;;  %v48_v58 = vrot.slane %v39_v47, %v47_v51 }
  0x11   :  { %541 = vmatprep.subr.bf16.mxu1 %v3492_v20  ;;  %239 = vmatprep.mubr.bf16.mxu1 %v4200_v1 }
  0x13   :  { %501 = vmatpush1.bf16.msra.mxu0 %v3498_v21 }
  0x14   :  { %542 = vmatpush1.bf16.msra.mxu1 %v3506_v22  ;;  %502 = vmatprep.subr.bf16.mxu0 %v3511_v23 }
  0x15   :  { %543 = vmatprep.subr.bf16.mxu1 %v3518_v24 }
  0x16   :  { %2822 = vmatmul.mubr.msk.bf16.gmra.mxu0 %vm101_vm0, %v3149_v25  ;;  %2826 = vmatmul.mubr.msk.bf16.gmra.mxu1 %vm101_vm0, %v3149_v25 }
  0x17   :  { %503 = vmatpush1.bf16.msra.mxu0 %v3527_v26  ;;  %176 = vmatprep.mubr.bf16.mxu0 %v4200_v1 }
  0x18   :  { %544 = vmatpush1.bf16.msra.mxu1 %v3534_v27  ;;  %504 = vmatprep.subr.bf16.mxu0 %v3539_v28 }
  0x19   :  { %545 = vmatprep.subr.bf16.mxu1 %v3545_v29  ;;  %249 = vmatprep.mubr.bf16.mxu1 %v4200_v1 }
  0x1b   :  { %505 = vmatpush1.bf16.msra.mxu0 %v3552_v30 }
  0x1c   :  { %546 = vmatpush1.bf16.msra.mxu1 %v3558_v31  ;;  %506 = vmatprep.subr.bf16.mxu0 %v3569_v33 }
  0x1d   :  { %547 = vmatprep.subr.bf16.mxu1 %v3581_v35 }
  0x1e   :  { %2823 = vmatmul.mubr.msk.bf16.gmra.mxu0 %vm101_vm0, %v3162_v32  ;;  %2827 = vmatmul.mubr.msk.bf16.gmra.mxu1 %vm101_vm0, %v3162_v32 }
  0x1f   :  { %507 = vmatpush1.bf16.msra.mxu0 %v3576_v34  ;;  %526 = vmatprep.mubr.bf16.mxu0 %v4200_v1 }
  0x20   :  { %548 = vmatpush1.bf16.msra.mxu1 %v3586_v36  ;;  %508 = vmatprep.subr.bf16.mxu0 %v3591_v37 }
  0x21   :  { %549 = vmatprep.subr.bf16.mxu1 %v3597_v38  ;;  %567 = vmatprep.mubr.bf16.mxu1 %v4200_v1 }
  0x23   :  { %509 = vmatpush1.bf16.msra.mxu0 %v3605_v39 }
  0x24   :  { %550 = vmatpush1.bf16.msra.mxu1 %v3612_v40  ;;  %805 = vmatprep.subr.bf16.mxu0 %v3413_v7 }
  0x25   :  { %846 = vmatprep.subr.bf16.mxu1 %v3424_v9 }
  0x26   :  { %527 = vmatmul.mubr.bf16.vlgmr.msra.gmra.mxu0 %v3352_v41 }
  0x27   :  { %568 = vmatmul.mubr.bf16.vlgmr.msra.gmra.mxu1 %v3352_v41  ;;  %806 = vmatpush1.bf16.msra.mxu0 %v3408_v6 }
  0x28   :  { %847 = vmatpush1.bf16.msra.mxu1 %v3418_v8  ;;  %807 = vmatprep.subr.bf16.mxu0 %v3431_v10 }
  0x29   :  { %848 = vmatprep.subr.bf16.mxu1 %v3443_v12  ;;  %837 = vmatprep.mubr.bf16.mxu0 %v4200_v1 }
  0x2a   :  { %878 = vmatprep.mubr.bf16.mxu1 %v4200_v1 }
  0x2b   :  { %808 = vmatpush1.bf16.msra.mxu0 %v3438_v11 }
  0x2c   :  { %849 = vmatpush1.bf16.msra.mxu1 %v3450_v13  ;;  %809 = vmatprep.subr.bf16.mxu0 %v3461_v15 }
  0x2d   :  { %850 = vmatprep.subr.bf16.mxu1 %v3472_v17 }
  0x2f   :  { %810 = vmatpush1.bf16.msra.mxu0 %v3467_v16 }
  0x30   :  { %851 = vmatpush1.bf16.msra.mxu1 %v3479_v18  ;;  %811 = vmatprep.subr.bf16.mxu0 %v3484_v19 }
  0x31   :  { %852 = vmatprep.subr.bf16.mxu1 %v3492_v20 }
  0x33   :  { %812 = vmatpush1.bf16.msra.mxu0 %v3498_v21 }
  0x34   :  { %853 = vmatpush1.bf16.msra.mxu1 %v3506_v22  ;;  %813 = vmatprep.subr.bf16.mxu0 %v3511_v23 }
  0x35   :  { %854 = vmatprep.subr.bf16.mxu1 %v3518_v24 }
  0x37   :  { %814 = vmatpush1.bf16.msra.mxu0 %v3527_v26 }
  0x38   :  { %855 = vmatpush1.bf16.msra.mxu1 %v3534_v27  ;;  %815 = vmatprep.subr.bf16.mxu0 %v3539_v28 }
  0x39   :  { %856 = vmatprep.subr.bf16.mxu1 %v3545_v29 }
  0x3b   :  { %816 = vmatpush1.bf16.msra.mxu0 %v3552_v30 }
  0x3c   :  { %857 = vmatpush1.bf16.msra.mxu1 %v3558_v31  ;;  %817 = vmatprep.subr.bf16.mxu0 %v3569_v33 }
  0x3d   :  { %858 = vmatprep.subr.bf16.mxu1 %v3581_v35 }
  0x3f   :  { %818 = vmatpush1.bf16.msra.mxu0 %v3576_v34 }
  0x40   :  { %859 = vmatpush1.bf16.msra.mxu1 %v3586_v36  ;;  %819 = vmatprep.subr.bf16.mxu0 %v3591_v37 }
  0x41   :  { %860 = vmatprep.subr.bf16.mxu1 %v3597_v38 }
  0x43   :  { %820 = vmatpush1.bf16.msra.mxu0 %v3605_v39 }
  0x44   :  { %861 = vmatpush1.bf16.msra.mxu1 %v3612_v40  ;;  %1117 = vmatprep.subr.bf16.mxu0 %v3413_v7 }
  0x45   :  { %1158 = vmatprep.subr.bf16.mxu1 %v3424_v9 }
  0xc6   :  { %v3661_v48 = vpop.f32.mrf.mxu0  ;;  %v3663_v49 = vpop.f32.mrf.mxu1 }
  0xc8   :  { %v3667_v52 = vpop.f32.mrf.mxu0  ;;  %v3669_v53 = vpop.f32.mrf.mxu1 }
  0xca   :  { %v152_v56 = vpop.f32.mrf.mxu0  ;;  %v225_v57 = vpop.f32.mrf.mxu1 }
  0xcb   :  { %v3673_v59 = vadd.f32 %v152_v56, %v44_v54  ;;  %v3676_v60 = vadd.f32 %v225_v57, %v3665_v50 }
  0xcc   :  { %v154_v61 = vpop.f32.mrf.mxu0  ;;  %v227_v62 = vpop.f32.mrf.mxu1 }
  0xcd   :  { %v3678_v63 = vadd.f32 %v154_v61, %v48_v58  ;;  %v3681_v0 = vadd.f32 %v227_v62, %v3671_v55 }
  0xce   :  { %v158_v2 = vpop.f32.mrf.mxu0  ;;  %v231_v3 = vpop.f32.mrf.mxu1 }
  0xcf   :  { %v3683_v4 = vadd.f32 %v158_v2, %v44_v54  ;;  %v3686_v5 = vadd.f32 %v231_v3, %v3665_v50 }
  0xd0   :  { %v160_v14 = vpop.f32.mrf.mxu0  ;;  %v233_v25 = vpop.f32.mrf.mxu1 }
  0xd1   :  { %v3688_v32 = vadd.f32 %v160_v14, %v48_v58  ;;  %v3691_v41 = vadd.f32 %v233_v25, %v3671_v55 }
  0xd2   :  { %v162_v42 = vpop.f32.mrf.mxu0  ;;  %v235_v43 = vpop.f32.mrf.mxu1 }
  0xd3   :  { %4202 = vst [vmem:[#allocation5_spill] sm:$0xff] %v3691_v41  ;;  %v3693_v44 = vadd.f32 %v162_v42, %v44_v54  ;;  %v3696_v45 = vadd.f32 %v235_v43, %v3665_v50 }
  0xd4   :  { %v164_v46 = vpop.f32.mrf.mxu0  ;;  %v237_v47 = vpop.f32.mrf.mxu1 }
  0xd5   :  { %4203 = vst [vmem:[#allocation6_spill] sm:$0xff] %v3693_v44  ;;  %4204 = vst [vmem:[#allocation7_spill] sm:$0xff] %v3696_v45  ;;  %v3698_v51 = vadd.f32 %v164_v46, %v48_v58  ;;  %v3701_v56 = vadd.f32 %v237_v47, %v3671_v55 }
  0xd6   :  { %v168_v57 = vpop.f32.mrf.mxu0  ;;  %v241_v61 = vpop.f32.mrf.mxu1 }
  0xd7   :  { %4205 = vst [vmem:[#allocation8_spill] sm:$0xff] %v3698_v51  ;;  %4206 = vst [vmem:[#allocation9_spill] sm:$0xff] %v3701_v56  ;;  %v3703_v62 = vadd.f32 %v168_v57, %v44_v54  ;;  %v3706_v2 = vadd.f32 %v241_v61, %v3665_v50 }
  0xd8   :  { %v170_v3 = vpop.f32.mrf.mxu0  ;;  %v243_v14 = vpop.f32.mrf.mxu1 }
  0xd9   :  { %4207 = vst [vmem:[#allocation10_spill] sm:$0xff] %v3703_v62  ;;  %4208 = vst [vmem:[#allocation11_spill] sm:$0xff] %v3706_v2  ;;  %v3708_v25 = vadd.f32 %v170_v3, %v48_v58  ;;  %v3711_v42 = vadd.f32 %v243_v14, %v3671_v55 }
  0xda   :  { %v172_v43 = vpop.f32.mrf.mxu0  ;;  %v245_v46 = vpop.f32.mrf.mxu1 }
  0xdb   :  { %4209 = vst [vmem:[#allocation12_spill] sm:$0xff] %v3708_v25  ;;  %4210 = vst [vmem:[#allocation13_spill] sm:$0xff] %v3711_v42  ;;  %v3713_v1 = vadd.f32 %v172_v43, %v44_v54  ;;  %v3716_v47 = vadd.f32 %v245_v46, %v3665_v50 }
  0xdc   :  { %v174_v56 = vpop.f32.mrf.mxu0  ;;  %v247_v57 = vpop.f32.mrf.mxu1 }
  0xdd   :  { %4211 = vst [vmem:[#allocation14_spill] sm:$0xff] %v3713_v1  ;;  %4212 = vst [vmem:[#allocation15_spill] sm:$0xff] %v3716_v47  ;;  %v3718_v62 = vadd.f32 %v174_v56, %v48_v58  ;;  %v3721_v61 = vadd.f32 %v247_v57, %v3671_v55 }
  0xde   :  { %v178_v2 = vpop.f32.mrf.mxu0  ;;  %v251_v3 = vpop.f32.mrf.mxu1 }
  0xdf   :  { %4213 = vst [vmem:[#allocation16_spill] sm:$0xff] %v3718_v62  ;;  %4214 = vst [vmem:[#allocation17_spill] sm:$0xff] %v3721_v61  ;;  %v3723_v25 = vadd.f32 %v178_v2, %v44_v54  ;;  %v3726_v14 = vadd.f32 %v251_v3, %v3665_v50 }
  0xe0   :  { %v180_v42 = vpop.f32.mrf.mxu0  ;;  %v253_v43 = vpop.f32.mrf.mxu1 }
  0xe1   :  { %4215 = vst [vmem:[#allocation18_spill] sm:$0xff] %v3723_v25  ;;  %4216 = vst [vmem:[#allocation19_spill] sm:$0xff] %v3726_v14  ;;  %v3728_v1 = vadd.f32 %v180_v42, %v48_v58  ;;  %v3731_v46 = vadd.f32 %v253_v43, %v3671_v55  ;;  %v149_v25 = vadd.f32 %v3661_v48, %v44_v54 }
  0xe2   :  { %v182_v47 = vpop.f32.mrf.mxu0  ;;  %v255_v56 = vpop.f32.mrf.mxu1  ;;  %v151_v43 = vadd.f32 %v3667_v52, %v48_v58  ;;  %v224_v52 = vadd.f32 %v3669_v53, %v3671_v55 }
  0xe3   :  { %4217 = vst [vmem:[#allocation20_spill] sm:$0xff] %v3728_v1  ;;  %4218 = vst [vmem:[#allocation21_spill] sm:$0xff] %v3731_v46  ;;  %v3733_v62 = vadd.f32 %v182_v47, %v44_v54  ;;  %v3736_v57 = vadd.f32 %v255_v56, %v3665_v50  ;;  %v222_v54 = vadd.f32 %v3663_v49, %v3665_v50 }
  0xe4   :  { %v184_v61 = vpop.f32.mrf.mxu0  ;;  %v257_v2 = vpop.f32.mrf.mxu1 }
  0xe5   :  { %4219 = vst [vmem:[#allocation22_spill] sm:$0xff] %v3733_v62  ;;  %4220 = vst [vmem:[#allocation23_spill] sm:$0xff] %v3736_v57  ;;  %v3739_v3 = vadd.f32 %v184_v61, %v48_v58  ;;  %v3742_v14 = vadd.f32 %v257_v2, %v3671_v55 }
  0xe6   :  { %v528_v42 = vpop.f32.mrf.mxu0 }
  0xe7   :  { %v576_v46 = vadd.f32 %v528_v42, %v149_v25  ;;  %v569_v1 = vpop.f32.mrf.mxu1 }
  0xe8   :  { %v530_v45 = vpop.f32.mrf.mxu0  ;;  %v578_v61 = vadd.f32 %v569_v1, %v222_v54 }
  0xe9   :  { %v2860_v47 = vmul.f32 -1.442695, %v576_v46  ;;  %v577_v62 = vadd.f32 %v530_v45, %v151_v43  ;;  %v571_v51 = vpop.f32.mrf.mxu1 }
  0xea   :  { %v532_v56 = vpop.f32.mrf.mxu0  ;;  %v2862_v58 = vmul.f32 -1.442695, %v578_v61  ;;  %v579_v2 = vadd.f32 %v571_v51, %v224_v52 }
  0xeb   :  { %3223 = vpow2.f32 %v2860_v47  ;;  %v2861_v57 = vmul.f32 -1.442695, %v577_v62  ;;  %v573_v44 = vpop.f32.mrf.mxu1  ;;  %v4221_v56 = vmov 0  }
  0xec   :  { %v533_v41 = vpop.f32.mrf.mxu0 }
  0xed   :  { %3225 = vpow2.f32 %v2861_v57  ;;  %v574_v48 = vpop.f32.mrf.mxu1 }
  0xee   :  { %3227 = vpow2.f32 %v2862_v58 }
  0xf8   :  { %v3224_v25 = vpop.eup %3223 }
  0xf9   :  { %v589_v46 = vadd.f32 1.0, %v3224_v25 }
  0xfa   :  { %v3226_v45 = vpop.eup %3225 }
  0xfb   :  { %3229 = vrcp.f32 %v589_v46  ;;  %v590_v42 = vadd.f32 1.0, %v3226_v45  ;;  %v3228_v41 = vpop.eup %3227 }
  0xfc   :  { %3231 = vtanh.f32 %v579_v2  ;;  %v591_v43 = vadd.f32 1.0, %v3228_v41 }
  0xfd   :  { %3233 = vrcp.f32 %v590_v42 }
  0xfe   :  { %3235 = vrcp.f32 %v591_v43 }
 0x108   :  { %v3230_v44 = vpop.eup %3229 }
 0x109   :  { %v3232_v62 = vpop.eup %3231 }
 0x10a   :  { %v3234_v57 = vpop.eup %3233  ;;  %v600_v1 = vmul.f32 %v3232_v62, %v3230_v44 }
 0x10b   :  { %v599_v49 = vmul.f32 0.0, %v3234_v57  ;;  %v3236_v53 = vpop.eup %3235 }
 0x10d   :  { %v3749_v50 = vadd.f32 %v600_v1, %v599_v49 }
 0x10f   :  { %3237 = vtanh.f32 %v3749_v50 }
 0x11c   :  { %v3238_v55 = vpop.eup %3237 }
 0x11d   :  { %v603_v51 = vmul.f32 %v3238_v55, %v3236_v53 }
 0x11f   :  { %604 = vst [vmem:[%s4197_s4] sm:$0xff] %v603_v51  ;;  %v612_v47 = vpack.c.bf16 %v603_v51, %v603_v51 }
 0x121   :  { %838 = vmatmul.mubr.bf16.vlgmr.msra.gmra.mxu0 %v612_v47  ;;  %879 = vmatmul.mubr.bf16.vlgmr.msra.gmra.mxu1 %v612_v47 }
 0x122   :  { %1118 = vmatpush1.bf16.msra.mxu0 %v3408_v6  ;;  %1159 = vmatpush1.bf16.msra.mxu1 %v3418_v8 }
 0x123   :  { %1119 = vmatprep.subr.bf16.mxu0 %v3431_v10  ;;  %1160 = vmatprep.subr.bf16.mxu1 %v3443_v12 }
 0x124   :  { %1149 = vmatprep.mubr.bf16.mxu0 %v4221_v56  ;;  %1190 = vmatprep.mubr.bf16.mxu1 %v4221_v56 }
 0x126   :  { %1120 = vmatpush1.bf16.msra.mxu0 %v3438_v11  ;;  %1161 = vmatpush1.bf16.msra.mxu1 %v3450_v13 }
 0x127   :  { %1121 = vmatprep.subr.bf16.mxu0 %v3461_v15  ;;  %1162 = vmatprep.subr.bf16.mxu1 %v3472_v17 }
 0x12a   :  { %1122 = vmatpush1.bf16.msra.mxu0 %v3467_v16  ;;  %1163 = vmatpush1.bf16.msra.mxu1 %v3479_v18 }
 0x12b   :  { %1123 = vmatprep.subr.bf16.mxu0 %v3484_v19  ;;  %1164 = vmatprep.subr.bf16.mxu1 %v3492_v20 }
 0x12e   :  { %1124 = vmatpush1.bf16.msra.mxu0 %v3498_v21  ;;  %1165 = vmatpush1.bf16.msra.mxu1 %v3506_v22 }
 0x12f   :  { %1125 = vmatprep.subr.bf16.mxu0 %v3511_v23  ;;  %1166 = vmatprep.subr.bf16.mxu1 %v3518_v24 }
 0x132   :  { %1126 = vmatpush1.bf16.msra.mxu0 %v3527_v26  ;;  %1167 = vmatpush1.bf16.msra.mxu1 %v3534_v27 }
 0x133   :  { %1127 = vmatprep.subr.bf16.mxu0 %v3539_v28  ;;  %1168 = vmatprep.subr.bf16.mxu1 %v3545_v29 }
 0x136   :  { %1128 = vmatpush1.bf16.msra.mxu0 %v3552_v30  ;;  %1169 = vmatpush1.bf16.msra.mxu1 %v3558_v31 }
 0x137   :  { %1129 = vmatprep.subr.bf16.mxu0 %v3569_v33  ;;  %1170 = vmatprep.subr.bf16.mxu1 %v3581_v35 }
 0x13a   :  { %1130 = vmatpush1.bf16.msra.mxu0 %v3576_v34  ;;  %1171 = vmatpush1.bf16.msra.mxu1 %v3586_v36 }
 0x13b   :  { %1131 = vmatprep.subr.bf16.mxu0 %v3591_v37  ;;  %1172 = vmatprep.subr.bf16.mxu1 %v3597_v38 }
 0x13e   :  { %1132 = vmatpush1.bf16.msra.mxu0 %v3605_v39  ;;  %1173 = vmatpush1.bf16.msra.mxu1 %v3612_v40 }
 0x13f   :  { %1429 = vmatprep.subr.bf16.mxu0 %v3413_v7  ;;  %1470 = vmatprep.subr.bf16.mxu1 %v3424_v9 }
 0x1e1   :  { %v839_v48 = vpop.f32.mrf.mxu0  ;;  %v880_v54 = vpop.f32.mrf.mxu1 }
 0x1e2   :  { %v887_v61 = vadd.f32 %v839_v48, %v3673_v59  ;;  %v889_v7 = vadd.f32 %v880_v54, %v3676_v60 }
 0x1e3   :  { %v841_v52 = vpop.f32.mrf.mxu0  ;;  %v882_v58 = vpop.f32.mrf.mxu1 }
 0x1e4   :  { %v2895_v25 = vmul.f32 -1.442695, %v887_v61  ;;  %v888_v2 = vadd.f32 %v841_v52, %v3678_v63  ;;  %v2897_v62 = vmul.f32 -1.442695, %v889_v7  ;;  %v890_v9 = vadd.f32 %v882_v58, %v3681_v0  ;;  %v3858_v58 = vld [vmem:[%s4195_s2 + $0xe0] ss:$16 sps:$4 sm:$0xff]  }
 0x1e5   :  { %v843_v46 = vpop.f32.mrf.mxu0  ;;  %v884_v45 = vpop.f32.mrf.mxu1  ;;  %v3906_v7 = vld [vmem:[%s4195_s2 + $0xa0] ss:$16 sps:$4 sm:$0xff]  }
 0x1e6   :  { %3239 = vpow2.f32 %v2895_v25  ;;  %v2896_v42 = vmul.f32 -1.442695, %v888_v2  ;;  %v3863_v25 = vld [vmem:[%s4195_s2 + $0xe8] ss:$16 sps:$4 sm:$0xff]   ;;  %v3872_v2 = vld [vmem:[%s4195_s2 + $0xc4] ss:$16 sps:$4 sm:$0xff]  }
 0x1e7   :  { %v844_v41 = vpop.f32.mrf.mxu0  ;;  %v885_v44 = vpop.f32.mrf.mxu1  ;;  %v3877_v46 = vld [vmem:[%s4195_s2 + $0xcc] ss:$16 sps:$4 sm:$0xff]   ;;  %v3882_v45 = vld [vmem:[%s4195_s2 + $0xc0] ss:$16 sps:$4 sm:$0xff]  }
 0x1e8   :  { %3241 = vpow2.f32 %v2896_v42  ;;  %v3887_v42 = vld [vmem:[%s4195_s2 + $0xc8] ss:$16 sps:$4 sm:$0xff]   ;;  %v3896_v41 = vld [vmem:[%s4195_s2 + $0xa4] ss:$16 sps:$4 sm:$0xff]   ;;  %v3901_v44 = vld [vmem:[%s4195_s2 + $0xac] ss:$16 sps:$4 sm:$0xff]  }
 0x1e9   :  { %3243 = vpow2.f32 %v2897_v62  ;;  %v3911_v62 = vld [vmem:[%s4195_s2 + $0xa8] ss:$16 sps:$4 sm:$0xff]  }
 0x1ea   :  { %3245 = vtanh.f32 %v890_v9  ;;  %v3920_v9 = vld [vmem:[%s4195_s2 + $0x84] ss:$16 sps:$4 sm:$0xff]  }
 0x1f3   :  { %v3240_v57 = vpop.eup %3239 }
 0x1f4   :  { %v900_v43 = vadd.f32 1.0, %v3240_v57  ;;  %v3925_v57 = vld [vmem:[%s4195_s2 + $0x8c] ss:$16 sps:$4 sm:$0xff]  }
 0x1f5   :  { %v3242_v59 = vpop.eup %3241 }
 0x1f6   :  { %3247 = vrcp.f32 %v900_v43  ;;  %v901_v49 = vadd.f32 1.0, %v3242_v59  ;;  %v3244_v63 = vpop.eup %3243  ;;  %v3930_v43 = vld [vmem:[%s4195_s2 + $0x80] ss:$16 sps:$4 sm:$0xff]   ;;  %v3935_v59 = vld [vmem:[%s4195_s2 + $0x88] ss:$16 sps:$4 sm:$0xff]  }
 0x1f7   :  { %v3246_v1 = vpop.eup %3245  ;;  %v902_v47 = vadd.f32 1.0, %v3244_v63  ;;  %v3947_v63 = vld [vmem:[%s4195_s2 + $0x6c] ss:$16 sps:$4 sm:$0xff]  }
 0x1f8   :  { %3249 = vrcp.f32 %v901_v49  ;;  %v3942_v49 = vld [vmem:[%s4195_s2 + $0x64] ss:$16 sps:$4 sm:$0xff]  }
 0x1f9   :  { %3251 = vrcp.f32 %v902_v47  ;;  %v3978_v47 = vld [vmem:[%s4195_s2 + $0x40] ss:$16 sps:$4 sm:$0xff]  }
 0x203   :  { %v3248_v53 = vpop.eup %3247 }
 0x204   :  { %v911_v55 = vmul.f32 %v3248_v53, %v3246_v1  ;;  %v3954_v1 = vld [vmem:[%s4195_s2 + $0x60] ss:$16 sps:$4 sm:$0xff]   ;;  %v3959_v53 = vld [vmem:[%s4195_s2 + $0x68] ss:$16 sps:$4 sm:$0xff]  }
 0x205   :  { %v3250_v51 = vpop.eup %3249 }
 0x206   :  { %v910_v48 = vmul.f32 %v3250_v51, %v3749_v50  ;;  %v3252_v0 = vpop.eup %3251  ;;  %v3853_v50 = vld [vmem:[%s4195_s2 + $0xec] ss:$16 sps:$4 sm:$0xff]  }
 0x207   :  { %v3971_v51 = vld [vmem:[%s4195_s2 + $0x4c] ss:$16 sps:$4 sm:$0xff]  }
 0x208   :  { %v3794_v60 = vadd.f32 %v911_v55, %v910_v48  ;;  %v3966_v55 = vld [vmem:[%s4195_s2 + $0x44] ss:$16 sps:$4 sm:$0xff]   ;;  %v3983_v48 = vld [vmem:[%s4195_s2 + $0x48] ss:$16 sps:$4 sm:$0xff]  }
 0x20a   :  { %3253 = vtanh.f32 %v3794_v60 }
 0x217   :  { %v3254_v54 = vpop.eup %3253 }
 0x218   :  { %v914_v61 = vmul.f32 %v3254_v54, %v3252_v0  ;;  %v3995_v0 = vld [vmem:[%s4195_s2 + $0x2c] ss:$16 sps:$4 sm:$0xff]   ;;  %v4002_v54 = vld [vmem:[%s4195_s2 + $0x20] ss:$16 sps:$4 sm:$0xff]  }
 0x21a   :  { %2898 = vst [vmem:[%s4197_s4 + $0x8] sm:$0xff] %v914_v61  ;;  %v924_v52 = vpack.c.bf16 %v914_v61, %v914_v61  ;;  %v4007_v61 = vld [vmem:[%s4195_s2 + $0x28] ss:$16 sps:$4 sm:$0xff]  }
 0x21c   :  { %1150 = vmatmul.mubr.bf16.vlgmr.msra.gmra.mxu0 %v924_v52  ;;  %1191 = vmatmul.mubr.bf16.vlgmr.msra.gmra.mxu1 %v924_v52  ;;  %v4014_v52 = vld [vmem:[%s4195_s2 + $0x4] ss:$16 sps:$4 sm:$0xff]  }
 0x21d   :  { %1430 = vmatpush1.bf16.msra.mxu0 %v3408_v6  ;;  %1471 = vmatpush1.bf16.msra.mxu1 %v3418_v8 }
 0x21e   :  { %1431 = vmatprep.subr.bf16.mxu0 %v3431_v10  ;;  %1472 = vmatprep.subr.bf16.mxu1 %v3443_v12 }
 0x21f   :  { %1461 = vmatprep.mubr.bf16.mxu0 %v4221_v56  ;;  %1502 = vmatprep.mubr.bf16.mxu1 %v4221_v56 }
 0x221   :  { %1432 = vmatpush1.bf16.msra.mxu0 %v3438_v11  ;;  %1473 = vmatpush1.bf16.msra.mxu1 %v3450_v13 }
 0x222   :  { %1433 = vmatprep.subr.bf16.mxu0 %v3461_v15  ;;  %1474 = vmatprep.subr.bf16.mxu1 %v3472_v17 }
 0x225   :  { %1434 = vmatpush1.bf16.msra.mxu0 %v3467_v16  ;;  %1475 = vmatpush1.bf16.msra.mxu1 %v3479_v18 }
 0x226   :  { %1435 = vmatprep.subr.bf16.mxu0 %v3484_v19  ;;  %1476 = vmatprep.subr.bf16.mxu1 %v3492_v20 }
 0x229   :  { %1436 = vmatpush1.bf16.msra.mxu0 %v3498_v21  ;;  %1477 = vmatpush1.bf16.msra.mxu1 %v3506_v22 }
 0x22a   :  { %1437 = vmatprep.subr.bf16.mxu0 %v3511_v23  ;;  %1478 = vmatprep.subr.bf16.mxu1 %v3518_v24  ;;  %v4222_v23 = vld [vmem:[#allocation5_spill] sm:$0xff] }
 0x22d   :  { %1438 = vmatpush1.bf16.msra.mxu0 %v3527_v26  ;;  %1479 = vmatpush1.bf16.msra.mxu1 %v3534_v27 }
 0x22e   :  { %1439 = vmatprep.subr.bf16.mxu0 %v3539_v28  ;;  %1480 = vmatprep.subr.bf16.mxu1 %v3545_v29 }
 0x231   :  { %1440 = vmatpush1.bf16.msra.mxu0 %v3552_v30  ;;  %1481 = vmatpush1.bf16.msra.mxu1 %v3558_v31 }
 0x232   :  { %1441 = vmatprep.subr.bf16.mxu0 %v3569_v33  ;;  %1482 = vmatprep.subr.bf16.mxu1 %v3581_v35 }
 0x235   :  { %1442 = vmatpush1.bf16.msra.mxu0 %v3576_v34  ;;  %1483 = vmatpush1.bf16.msra.mxu1 %v3586_v36 }
 0x236   :  { %1443 = vmatprep.subr.bf16.mxu0 %v3591_v37  ;;  %1484 = vmatprep.subr.bf16.mxu1 %v3597_v38 }
 0x239   :  { %1444 = vmatpush1.bf16.msra.mxu0 %v3605_v39  ;;  %1485 = vmatpush1.bf16.msra.mxu1 %v3612_v40 }
 0x23a   :  { %1782 = vmatprep.subr.bf16.mxu1 %v3853_v50 }
 0x2dc   :  { %v1151_v6 = vpop.f32.mrf.mxu0  ;;  %v1192_v8 = vpop.f32.mrf.mxu1 }
 0x2dd   :  { %v1199_v10 = vadd.f32 %v1151_v6, %v3683_v4  ;;  %v1201_v21 = vadd.f32 %v1192_v8, %v3686_v5  ;;  %v4019_v6 = vld [vmem:[%s4195_s2 + $0xc] ss:$16 sps:$4 sm:$0xff]   ;;  %v4026_v8 = vld [vmem:[%s4195_s2] ss:$16 sps:$4 sm:$0xff]  }
 0x2de   :  { %v1153_v11 = vpop.f32.mrf.mxu0  ;;  %v1194_v12 = vpop.f32.mrf.mxu1 }
 0x2df   :  { %v2931_v13 = vmul.f32 -1.442695, %v1199_v10  ;;  %v1200_v15 = vadd.f32 %v1153_v11, %v3688_v32  ;;  %v2933_v22 = vmul.f32 -1.442695, %v1201_v21  ;;  %v1202_v24 = vadd.f32 %v1194_v12, %v4222_v23  ;;  %v3848_v32 = vld [vmem:[%s4195_s2 + $0xe4] ss:$16 sps:$4 sm:$0xff]  }
 0x2e0   :  { %v1155_v16 = vpop.f32.mrf.mxu0  ;;  %v1196_v17 = vpop.f32.mrf.mxu1  ;;  %1741 = vmatprep.subr.bf16.mxu0 %v3848_v32  ;;  %v4031_v10 = vld [vmem:[%s4195_s2 + $0x8] ss:$16 sps:$4 sm:$0xff]  }
 0x2e1   :  { %3255 = vpow2.f32 %v2931_v13  ;;  %v2932_v18 = vmul.f32 -1.442695, %v1200_v15  ;;  %v4223_v13 = vld [vmem:[#allocation6_spill] sm:$0xff] }
 0x2e2   :  { %v1156_v19 = vpop.f32.mrf.mxu0  ;;  %v1197_v20 = vpop.f32.mrf.mxu1 }
 0x2e3   :  { %3257 = vpow2.f32 %v2932_v18  ;;  %v4224_v19 = vld [vmem:[#allocation8_spill] sm:$0xff] }
 0x2e4   :  { %3259 = vpow2.f32 %v2933_v22 }
 0x2e5   :  { %3261 = vtanh.f32 %v1202_v24 }
 0x2ee   :  { %v3256_v26 = vpop.eup %3255 }
 0x2ef   :  { %v1212_v27 = vadd.f32 1.0, %v3256_v26 }
 0x2f0   :  { %v3258_v28 = vpop.eup %3257 }
 0x2f1   :  { %3263 = vrcp.f32 %v1212_v27  ;;  %v1213_v29 = vadd.f32 1.0, %v3258_v28  ;;  %v3260_v30 = vpop.eup %3259  ;;  %v4225_v27 = vld [vmem:[#allocation7_spill] sm:$0xff] }
 0x2f2   :  { %v3262_v31 = vpop.eup %3261  ;;  %v1214_v36 = vadd.f32 1.0, %v3260_v30  ;;  %v4226_v30 = vld [vmem:[#allocation9_spill] sm:$0xff] }
 0x2f3   :  { %3265 = vrcp.f32 %v1213_v29 }
 0x2f4   :  { %3267 = vrcp.f32 %v1214_v36 }
 0x2fe   :  { %v3264_v33 = vpop.eup %3263 }
 0x2ff   :  { %v1223_v34 = vmul.f32 %v3264_v33, %v3262_v31 }
 0x300   :  { %v3266_v35 = vpop.eup %3265 }
 0x301   :  { %v1222_v37 = vmul.f32 %v3266_v35, %v3794_v60  ;;  %v3268_v39 = vpop.eup %3267  ;;  %v3990_v60 = vld [vmem:[%s4195_s2 + $0x24] ss:$16 sps:$4 sm:$0xff]  }
 0x303   :  { %v3837_v38 = vadd.f32 %v1223_v34, %v1222_v37 }
 0x305   :  { %3269 = vtanh.f32 %v3837_v38 }
 0x312   :  { %v3270_v40 = vpop.eup %3269 }
 0x313   :  { %v1226_v4 = vmul.f32 %v3270_v40, %v3268_v39 }
 0x315   :  { %2934 = vst [vmem:[%s4197_s4 + $0x10] sm:$0xff] %v1226_v4  ;;  %v1236_v5 = vpack.c.bf16 %v1226_v4, %v1226_v4 }
 0x317   :  { %1462 = vmatmul.mubr.bf16.vlgmr.msra.gmra.mxu0 %v1236_v5  ;;  %1503 = vmatmul.mubr.bf16.vlgmr.msra.gmra.mxu1 %v1236_v5 }
 0x318   :  { %1773 = vmatprep.mubr.bf16.mxu0 %v4221_v56  ;;  %1814 = vmatprep.mubr.bf16.mxu1 %v4221_v56 }
 0x319   :  { %1742 = vmatpush1.bf16.msra.mxu0 %v3858_v58  ;;  %1783 = vmatpush1.bf16.msra.mxu1 %v3863_v25 }
 0x31a   :  { %1743 = vmatprep.subr.bf16.mxu0 %v3872_v2  ;;  %1784 = vmatprep.subr.bf16.mxu1 %v3877_v46 }
 0x31d   :  { %1744 = vmatpush1.bf16.msra.mxu0 %v3882_v45  ;;  %1785 = vmatpush1.bf16.msra.mxu1 %v3887_v42 }
 0x31e   :  { %1745 = vmatprep.subr.bf16.mxu0 %v3896_v41  ;;  %1786 = vmatprep.subr.bf16.mxu1 %v3901_v44 }
 0x321   :  { %1746 = vmatpush1.bf16.msra.mxu0 %v3906_v7  ;;  %1787 = vmatpush1.bf16.msra.mxu1 %v3911_v62 }
 0x322   :  { %1747 = vmatprep.subr.bf16.mxu0 %v3920_v9  ;;  %1788 = vmatprep.subr.bf16.mxu1 %v3925_v57 }
 0x325   :  { %1748 = vmatpush1.bf16.msra.mxu0 %v3930_v43  ;;  %1789 = vmatpush1.bf16.msra.mxu1 %v3935_v59 }
 0x326   :  { %1749 = vmatprep.subr.bf16.mxu0 %v3942_v49  ;;  %1790 = vmatprep.subr.bf16.mxu1 %v3947_v63 }
 0x329   :  { %1750 = vmatpush1.bf16.msra.mxu0 %v3954_v1  ;;  %1791 = vmatpush1.bf16.msra.mxu1 %v3959_v53 }
 0x32a   :  { %1751 = vmatprep.subr.bf16.mxu0 %v3966_v55  ;;  %1792 = vmatprep.subr.bf16.mxu1 %v3971_v51 }
 0x32d   :  { %1752 = vmatpush1.bf16.msra.mxu0 %v3978_v47  ;;  %1793 = vmatpush1.bf16.msra.mxu1 %v3983_v48 }
 0x32e   :  { %1753 = vmatprep.subr.bf16.mxu0 %v3990_v60  ;;  %1794 = vmatprep.subr.bf16.mxu1 %v3995_v0 }
 0x331   :  { %1754 = vmatpush1.bf16.msra.mxu0 %v4002_v54  ;;  %1795 = vmatpush1.bf16.msra.mxu1 %v4007_v61 }
 0x332   :  { %1755 = vmatprep.subr.bf16.mxu0 %v4014_v52  ;;  %1796 = vmatprep.subr.bf16.mxu1 %v4019_v6 }
 0x335   :  { %1756 = vmatpush1.bf16.msra.mxu0 %v4026_v8  ;;  %1797 = vmatpush1.bf16.msra.mxu1 %v4031_v10 }
 0x336   :  { %2053 = vmatprep.subr.bf16.mxu0 %v3848_v32  ;;  %2094 = vmatprep.subr.bf16.mxu1 %v3853_v50 }
 0x3d7   :  { %v1463_v11 = vpop.f32.mrf.mxu0  ;;  %v1504_v12 = vpop.f32.mrf.mxu1 }
 0x3d8   :  { %v1511_v15 = vadd.f32 %v1463_v11, %v4223_v13  ;;  %v1513_v28 = vadd.f32 %v1504_v12, %v4225_v27 }
 0x3d9   :  { %v1465_v16 = vpop.f32.mrf.mxu0  ;;  %v1506_v17 = vpop.f32.mrf.mxu1 }
 0x3da   :  { %v2967_v18 = vmul.f32 -1.442695, %v1511_v15  ;;  %v1512_v20 = vadd.f32 %v1465_v16, %v4224_v19  ;;  %v2969_v29 = vmul.f32 -1.442695, %v1513_v28  ;;  %v1514_v31 = vadd.f32 %v1506_v17, %v4226_v30 }
 0x3db   :  { %v1467_v21 = vpop.f32.mrf.mxu0  ;;  %v1508_v22 = vpop.f32.mrf.mxu1 }
 0x3dc   :  { %3271 = vpow2.f32 %v2967_v18  ;;  %v2968_v23 = vmul.f32 -1.442695, %v1512_v20  ;;  %v4227_v20 = vld [vmem:[#allocation10_spill] sm:$0xff] }
 0x3dd   :  { %v1468_v24 = vpop.f32.mrf.mxu0  ;;  %v1509_v26 = vpop.f32.mrf.mxu1 }
 0x3de   :  { %3273 = vpow2.f32 %v2968_v23  ;;  %v4228_v26 = vld [vmem:[#allocation12_spill] sm:$0xff] }
 0x3df   :  { %3275 = vpow2.f32 %v2969_v29 }
 0x3e0   :  { %3277 = vtanh.f32 %v1514_v31 }
 0x3e9   :  { %v3272_v33 = vpop.eup %3271 }
 0x3ea   :  { %v1524_v34 = vadd.f32 1.0, %v3272_v33 }
 0x3eb   :  { %v3274_v35 = vpop.eup %3273 }
 0x3ec   :  { %3279 = vrcp.f32 %v1524_v34  ;;  %v1525_v36 = vadd.f32 1.0, %v3274_v35  ;;  %v3276_v37 = vpop.eup %3275  ;;  %v4229_v34 = vld [vmem:[#allocation11_spill] sm:$0xff] }
 0x3ed   :  { %v3278_v39 = vpop.eup %3277  ;;  %v1526_v11 = vadd.f32 1.0, %v3276_v37  ;;  %v4230_v37 = vld [vmem:[#allocation13_spill] sm:$0xff] }
 0x3ee   :  { %3281 = vrcp.f32 %v1525_v36 }
 0x3ef   :  { %3283 = vrcp.f32 %v1526_v11 }
 0x3f9   :  { %v3280_v40 = vpop.eup %3279 }
 0x3fa   :  { %v1535_v4 = vmul.f32 %v3280_v40, %v3278_v39 }
 0x3fb   :  { %v3282_v5 = vpop.eup %3281 }
 0x3fc   :  { %v1534_v13 = vmul.f32 %v3282_v5, %v3837_v38  ;;  %v3284_v15 = vpop.eup %3283 }
 0x3fe   :  { %v4044_v12 = vadd.f32 %v1535_v4, %v1534_v13 }
 0x400   :  { %3285 = vtanh.f32 %v4044_v12 }
 0x40d   :  { %v3286_v16 = vpop.eup %3285 }
 0x40e   :  { %v1538_v17 = vmul.f32 %v3286_v16, %v3284_v15 }
 0x410   :  { %2970 = vst [vmem:[%s4197_s4 + $0x18] sm:$0xff] %v1538_v17  ;;  %v1548_v18 = vpack.c.bf16 %v1538_v17, %v1538_v17 }
 0x412   :  { %1774 = vmatmul.mubr.bf16.vlgmr.msra.gmra.mxu0 %v1548_v18  ;;  %1815 = vmatmul.mubr.bf16.vlgmr.msra.gmra.mxu1 %v1548_v18 }
 0x413   :  { %2054 = vmatpush1.bf16.msra.mxu0 %v3858_v58  ;;  %2095 = vmatpush1.bf16.msra.mxu1 %v3863_v25 }
 0x414   :  { %2055 = vmatprep.subr.bf16.mxu0 %v3872_v2  ;;  %2096 = vmatprep.subr.bf16.mxu1 %v3877_v46 }
 0x415   :  { %2085 = vmatprep.mubr.bf16.mxu0 %v4221_v56  ;;  %2126 = vmatprep.mubr.bf16.mxu1 %v4221_v56 }
 0x417   :  { %2056 = vmatpush1.bf16.msra.mxu0 %v3882_v45  ;;  %2097 = vmatpush1.bf16.msra.mxu1 %v3887_v42 }
 0x418   :  { %2057 = vmatprep.subr.bf16.mxu0 %v3896_v41  ;;  %2098 = vmatprep.subr.bf16.mxu1 %v3901_v44 }
 0x41b   :  { %2058 = vmatpush1.bf16.msra.mxu0 %v3906_v7  ;;  %2099 = vmatpush1.bf16.msra.mxu1 %v3911_v62 }
 0x41c   :  { %2059 = vmatprep.subr.bf16.mxu0 %v3920_v9  ;;  %2100 = vmatprep.subr.bf16.mxu1 %v3925_v57 }
 0x41f   :  { %2060 = vmatpush1.bf16.msra.mxu0 %v3930_v43  ;;  %2101 = vmatpush1.bf16.msra.mxu1 %v3935_v59 }
 0x420   :  { %2061 = vmatprep.subr.bf16.mxu0 %v3942_v49  ;;  %2102 = vmatprep.subr.bf16.mxu1 %v3947_v63 }
 0x423   :  { %2062 = vmatpush1.bf16.msra.mxu0 %v3954_v1  ;;  %2103 = vmatpush1.bf16.msra.mxu1 %v3959_v53 }
 0x424   :  { %2063 = vmatprep.subr.bf16.mxu0 %v3966_v55  ;;  %2104 = vmatprep.subr.bf16.mxu1 %v3971_v51 }
 0x427   :  { %2064 = vmatpush1.bf16.msra.mxu0 %v3978_v47  ;;  %2105 = vmatpush1.bf16.msra.mxu1 %v3983_v48 }
 0x428   :  { %2065 = vmatprep.subr.bf16.mxu0 %v3990_v60  ;;  %2106 = vmatprep.subr.bf16.mxu1 %v3995_v0 }
 0x42b   :  { %2066 = vmatpush1.bf16.msra.mxu0 %v4002_v54  ;;  %2107 = vmatpush1.bf16.msra.mxu1 %v4007_v61 }
 0x42c   :  { %2067 = vmatprep.subr.bf16.mxu0 %v4014_v52  ;;  %2108 = vmatprep.subr.bf16.mxu1 %v4019_v6 }
 0x42f   :  { %2068 = vmatpush1.bf16.msra.mxu0 %v4026_v8  ;;  %2109 = vmatpush1.bf16.msra.mxu1 %v4031_v10 }
 0x430   :  { %2365 = vmatprep.subr.bf16.mxu0 %v3848_v32  ;;  %2406 = vmatprep.subr.bf16.mxu1 %v3853_v50 }
 0x4d2   :  { %v1775_v38 = vpop.f32.mrf.mxu0  ;;  %v1816_v19 = vpop.f32.mrf.mxu1 }
 0x4d3   :  { %v1823_v21 = vadd.f32 %v1775_v38, %v4227_v20  ;;  %v1825_v35 = vadd.f32 %v1816_v19, %v4229_v34 }
 0x4d4   :  { %v1777_v22 = vpop.f32.mrf.mxu0  ;;  %v1818_v23 = vpop.f32.mrf.mxu1 }
 0x4d5   :  { %v3003_v24 = vmul.f32 -1.442695, %v1823_v21  ;;  %v1824_v27 = vadd.f32 %v1777_v22, %v4228_v26  ;;  %v3005_v36 = vmul.f32 -1.442695, %v1825_v35  ;;  %v1826_v39 = vadd.f32 %v1818_v23, %v4230_v37 }
 0x4d6   :  { %v1779_v28 = vpop.f32.mrf.mxu0  ;;  %v1820_v29 = vpop.f32.mrf.mxu1 }
 0x4d7   :  { %3287 = vpow2.f32 %v3003_v24  ;;  %v3004_v30 = vmul.f32 -1.442695, %v1824_v27  ;;  %v4231_v27 = vld [vmem:[#allocation14_spill] sm:$0xff] }
 0x4d8   :  { %v1780_v31 = vpop.f32.mrf.mxu0  ;;  %v1821_v33 = vpop.f32.mrf.mxu1 }
 0x4d9   :  { %3289 = vpow2.f32 %v3004_v30  ;;  %v4232_v33 = vld [vmem:[#allocation16_spill] sm:$0xff] }
 0x4da   :  { %3291 = vpow2.f32 %v3005_v36 }
 0x4db   :  { %3293 = vtanh.f32 %v1826_v39 }
 0x4e4   :  { %v3288_v40 = vpop.eup %3287 }
 0x4e5   :  { %v1836_v4 = vadd.f32 1.0, %v3288_v40 }
 0x4e6   :  { %v3290_v5 = vpop.eup %3289 }
 0x4e7   :  { %3295 = vrcp.f32 %v1836_v4  ;;  %v1837_v11 = vadd.f32 1.0, %v3290_v5  ;;  %v3292_v13 = vpop.eup %3291  ;;  %v4233_v4 = vld [vmem:[#allocation15_spill] sm:$0xff] }
 0x4e8   :  { %v3294_v15 = vpop.eup %3293  ;;  %v1838_v38 = vadd.f32 1.0, %v3292_v13 }
 0x4e9   :  { %3297 = vrcp.f32 %v1837_v11 }
 0x4ea   :  { %3299 = vrcp.f32 %v1838_v38 }
 0x4f4   :  { %v3296_v16 = vpop.eup %3295 }
 0x4f5   :  { %v1847_v17 = vmul.f32 %v3296_v16, %v3294_v15 }
 0x4f6   :  { %v3298_v18 = vpop.eup %3297 }
 0x4f7   :  { %v1846_v20 = vmul.f32 %v3298_v18, %v4044_v12  ;;  %v3300_v21 = vpop.eup %3299 }
 0x4f9   :  { %v4089_v19 = vadd.f32 %v1847_v17, %v1846_v20 }
 0x4fb   :  { %3301 = vtanh.f32 %v4089_v19 }
 0x508   :  { %v3302_v22 = vpop.eup %3301 }
 0x509   :  { %v1850_v23 = vmul.f32 %v3302_v22, %v3300_v21 }
 0x50b   :  { %3006 = vst [vmem:[%s4197_s4 + $0x20] sm:$0xff] %v1850_v23  ;;  %v1860_v24 = vpack.c.bf16 %v1850_v23, %v1850_v23 }
 0x50d   :  { %2086 = vmatmul.mubr.bf16.vlgmr.msra.gmra.mxu0 %v1860_v24  ;;  %2127 = vmatmul.mubr.bf16.vlgmr.msra.gmra.mxu1 %v1860_v24 }
 0x50e   :  { %2366 = vmatpush1.bf16.msra.mxu0 %v3858_v58  ;;  %2407 = vmatpush1.bf16.msra.mxu1 %v3863_v25 }
 0x50f   :  { %2367 = vmatprep.subr.bf16.mxu0 %v3872_v2  ;;  %2408 = vmatprep.subr.bf16.mxu1 %v3877_v46 }
 0x510   :  { %2397 = vmatprep.mubr.bf16.mxu0 %v4221_v56  ;;  %2438 = vmatprep.mubr.bf16.mxu1 %v4221_v56 }
 0x512   :  { %2368 = vmatpush1.bf16.msra.mxu0 %v3882_v45  ;;  %2409 = vmatpush1.bf16.msra.mxu1 %v3887_v42 }
 0x513   :  { %2369 = vmatprep.subr.bf16.mxu0 %v3896_v41  ;;  %2410 = vmatprep.subr.bf16.mxu1 %v3901_v44 }
 0x516   :  { %2370 = vmatpush1.bf16.msra.mxu0 %v3906_v7  ;;  %2411 = vmatpush1.bf16.msra.mxu1 %v3911_v62 }
 0x517   :  { %2371 = vmatprep.subr.bf16.mxu0 %v3920_v9  ;;  %2412 = vmatprep.subr.bf16.mxu1 %v3925_v57 }
 0x51a   :  { %2372 = vmatpush1.bf16.msra.mxu0 %v3930_v43  ;;  %2413 = vmatpush1.bf16.msra.mxu1 %v3935_v59 }
 0x51b   :  { %2373 = vmatprep.subr.bf16.mxu0 %v3942_v49  ;;  %2414 = vmatprep.subr.bf16.mxu1 %v3947_v63 }
 0x51e   :  { %2374 = vmatpush1.bf16.msra.mxu0 %v3954_v1  ;;  %2415 = vmatpush1.bf16.msra.mxu1 %v3959_v53 }
 0x51f   :  { %2375 = vmatprep.subr.bf16.mxu0 %v3966_v55  ;;  %2416 = vmatprep.subr.bf16.mxu1 %v3971_v51 }
 0x522   :  { %2376 = vmatpush1.bf16.msra.mxu0 %v3978_v47  ;;  %2417 = vmatpush1.bf16.msra.mxu1 %v3983_v48 }
 0x523   :  { %2377 = vmatprep.subr.bf16.mxu0 %v3990_v60  ;;  %2418 = vmatprep.subr.bf16.mxu1 %v3995_v0 }
 0x526   :  { %2378 = vmatpush1.bf16.msra.mxu0 %v4002_v54  ;;  %2419 = vmatpush1.bf16.msra.mxu1 %v4007_v61 }
 0x527   :  { %2379 = vmatprep.subr.bf16.mxu0 %v4014_v52  ;;  %2420 = vmatprep.subr.bf16.mxu1 %v4019_v6 }
 0x52a   :  { %2380 = vmatpush1.bf16.msra.mxu0 %v4026_v8  ;;  %2421 = vmatpush1.bf16.msra.mxu1 %v4031_v10 }
 0x52b   :  { %2677 = vmatprep.subr.bf16.mxu0 %v3848_v32  ;;  %2718 = vmatprep.subr.bf16.mxu1 %v3853_v50  ;;  %v4234_v50 = vld [vmem:[#allocation17_spill] sm:$0xff] }
 0x5cd   :  { %v2087_v12 = vpop.f32.mrf.mxu0  ;;  %v2128_v26 = vpop.f32.mrf.mxu1 }
 0x5ce   :  { %v2135_v28 = vadd.f32 %v2087_v12, %v4231_v27  ;;  %v2137_v32 = vadd.f32 %v2128_v26, %v4233_v4 }
 0x5cf   :  { %v2089_v29 = vpop.f32.mrf.mxu0  ;;  %v2130_v30 = vpop.f32.mrf.mxu1 }
 0x5d0   :  { %v3039_v31 = vmul.f32 -1.442695, %v2135_v28  ;;  %v2136_v34 = vadd.f32 %v2089_v29, %v4232_v33  ;;  %v3041_v5 = vmul.f32 -1.442695, %v2137_v32  ;;  %v2138_v11 = vadd.f32 %v2130_v30, %v4234_v50 }
 0x5d1   :  { %v2091_v35 = vpop.f32.mrf.mxu0  ;;  %v2132_v36 = vpop.f32.mrf.mxu1 }
 0x5d2   :  { %3303 = vpow2.f32 %v3039_v31  ;;  %v3040_v37 = vmul.f32 -1.442695, %v2136_v34  ;;  %v4239_v36 = vld [vmem:[#allocation22_spill] sm:$0xff] }
 0x5d3   :  { %v2092_v39 = vpop.f32.mrf.mxu0  ;;  %v2133_v40 = vpop.f32.mrf.mxu1 }
 0x5d4   :  { %3305 = vpow2.f32 %v3040_v37 }
 0x5d5   :  { %3307 = vpow2.f32 %v3041_v5 }
 0x5d6   :  { %3309 = vtanh.f32 %v2138_v11 }
 0x5df   :  { %v3304_v13 = vpop.eup %3303 }
 0x5e0   :  { %v2148_v15 = vadd.f32 1.0, %v3304_v13 }
 0x5e1   :  { %v3306_v16 = vpop.eup %3305 }
 0x5e2   :  { %3311 = vrcp.f32 %v2148_v15  ;;  %v2149_v17 = vadd.f32 1.0, %v3306_v16  ;;  %v3308_v18 = vpop.eup %3307  ;;  %v4240_v16 = vld [vmem:[#allocation23_spill] sm:$0xff] }
 0x5e3   :  { %v3310_v38 = vpop.eup %3309  ;;  %v2150_v23 = vadd.f32 1.0, %v3308_v18 }
 0x5e4   :  { %3313 = vrcp.f32 %v2149_v17 }
 0x5e5   :  { %3315 = vrcp.f32 %v2150_v23 }
 0x5ef   :  { %v3312_v20 = vpop.eup %3311 }
 0x5f0   :  { %v2159_v21 = vmul.f32 %v3312_v20, %v3310_v38 }
 0x5f1   :  { %v3314_v22 = vpop.eup %3313 }
 0x5f2   :  { %v2158_v24 = vmul.f32 %v3314_v22, %v4089_v19  ;;  %v3316_v26 = vpop.eup %3315 }
 0x5f4   :  { %v4134_v12 = vadd.f32 %v2159_v21, %v2158_v24 }
 0x5f6   :  { %3317 = vtanh.f32 %v4134_v12 }
 0x603   :  { %v3318_v27 = vpop.eup %3317 }
 0x604   :  { %v2162_v28 = vmul.f32 %v3318_v27, %v3316_v26 }
 0x606   :  { %3042 = vst [vmem:[%s4197_s4 + $0x28] sm:$0xff] %v2162_v28  ;;  %v2172_v29 = vpack.c.bf16 %v2162_v28, %v2162_v28 }
 0x608   :  { %2398 = vmatmul.mubr.bf16.vlgmr.msra.gmra.mxu0 %v2172_v29  ;;  %2439 = vmatmul.mubr.bf16.vlgmr.msra.gmra.mxu1 %v2172_v29 }
 0x609   :  { %2678 = vmatpush1.bf16.msra.mxu0 %v3858_v58  ;;  %2719 = vmatpush1.bf16.msra.mxu1 %v3863_v25  ;;  %v4235_v25 = vld [vmem:[#allocation18_spill] sm:$0xff] }
 0x60a   :  { %2679 = vmatprep.subr.bf16.mxu0 %v3872_v2  ;;  %2720 = vmatprep.subr.bf16.mxu1 %v3877_v46 }
 0x60b   :  { %2709 = vmatprep.mubr.bf16.mxu0 %v4221_v56  ;;  %2750 = vmatprep.mubr.bf16.mxu1 %v4221_v56 }
 0x60d   :  { %2680 = vmatpush1.bf16.msra.mxu0 %v3882_v45  ;;  %2721 = vmatpush1.bf16.msra.mxu1 %v3887_v42 }
 0x60e   :  { %2681 = vmatprep.subr.bf16.mxu0 %v3896_v41  ;;  %2722 = vmatprep.subr.bf16.mxu1 %v3901_v44  ;;  %v4236_v41 = vld [vmem:[#allocation20_spill] sm:$0xff] }
 0x611   :  { %2682 = vmatpush1.bf16.msra.mxu0 %v3906_v7  ;;  %2723 = vmatpush1.bf16.msra.mxu1 %v3911_v62 }
 0x612   :  { %2683 = vmatprep.subr.bf16.mxu0 %v3920_v9  ;;  %2724 = vmatprep.subr.bf16.mxu1 %v3925_v57 }
 0x615   :  { %2684 = vmatpush1.bf16.msra.mxu0 %v3930_v43  ;;  %2725 = vmatpush1.bf16.msra.mxu1 %v3935_v59  ;;  %v4237_v59 = vld [vmem:[#allocation19_spill] sm:$0xff] }
 0x616   :  { %2685 = vmatprep.subr.bf16.mxu0 %v3942_v49  ;;  %2726 = vmatprep.subr.bf16.mxu1 %v3947_v63 }
 0x619   :  { %2686 = vmatpush1.bf16.msra.mxu0 %v3954_v1  ;;  %2727 = vmatpush1.bf16.msra.mxu1 %v3959_v53  ;;  %v4238_v1 = vld [vmem:[#allocation21_spill] sm:$0xff] }
 0x61a   :  { %2687 = vmatprep.subr.bf16.mxu0 %v3966_v55  ;;  %2728 = vmatprep.subr.bf16.mxu1 %v3971_v51 }
 0x61d   :  { %2688 = vmatpush1.bf16.msra.mxu0 %v3978_v47  ;;  %2729 = vmatpush1.bf16.msra.mxu1 %v3983_v48 }
 0x61e   :  { %2689 = vmatprep.subr.bf16.mxu0 %v3990_v60  ;;  %2730 = vmatprep.subr.bf16.mxu1 %v3995_v0 }
 0x621   :  { %2690 = vmatpush1.bf16.msra.mxu0 %v4002_v54  ;;  %2731 = vmatpush1.bf16.msra.mxu1 %v4007_v61 }
 0x622   :  { %2691 = vmatprep.subr.bf16.mxu0 %v4014_v52  ;;  %2732 = vmatprep.subr.bf16.mxu1 %v4019_v6 }
 0x625   :  { %2692 = vmatpush1.bf16.msra.mxu0 %v4026_v8  ;;  %2733 = vmatpush1.bf16.msra.mxu1 %v4031_v10 }
 0x6c8   :  { %v2399_v56 = vpop.f32.mrf.mxu0  ;;  %v2440_v58 = vpop.f32.mrf.mxu1 }
 0x6c9   :  { %v2447_v2 = vadd.f32 %v2399_v56, %v4235_v25  ;;  %v2449_v49 = vadd.f32 %v2440_v58, %v4237_v59 }
 0x6ca   :  { %v2401_v46 = vpop.f32.mrf.mxu0  ;;  %v2442_v45 = vpop.f32.mrf.mxu1 }
 0x6cb   :  { %v3075_v42 = vmul.f32 -1.442695, %v2447_v2  ;;  %v2448_v44 = vadd.f32 %v2401_v46, %v4236_v41  ;;  %v3077_v63 = vmul.f32 -1.442695, %v2449_v49  ;;  %v2450_v53 = vadd.f32 %v2442_v45, %v4238_v1 }
 0x6cc   :  { %v2403_v7 = vpop.f32.mrf.mxu0  ;;  %v2444_v62 = vpop.f32.mrf.mxu1 }
 0x6cd   :  { %3319 = vpow2.f32 %v3075_v42  ;;  %v3076_v9 = vmul.f32 -1.442695, %v2448_v44 }
 0x6ce   :  { %v2404_v57 = vpop.f32.mrf.mxu0  ;;  %v2445_v43 = vpop.f32.mrf.mxu1 }
 0x6cf   :  { %3321 = vpow2.f32 %v3076_v9 }
 0x6d0   :  { %3323 = vpow2.f32 %v3077_v63 }
 0x6d1   :  { %3325 = vtanh.f32 %v2450_v53 }
 0x6da   :  { %v3320_v55 = vpop.eup %3319 }
 0x6db   :  { %v2460_v51 = vadd.f32 1.0, %v3320_v55 }
 0x6dc   :  { %v3322_v47 = vpop.eup %3321 }
 0x6dd   :  { %3327 = vrcp.f32 %v2460_v51  ;;  %v2461_v48 = vadd.f32 1.0, %v3322_v47  ;;  %v3324_v60 = vpop.eup %3323 }
 0x6de   :  { %v3326_v0 = vpop.eup %3325  ;;  %v2462_v6 = vadd.f32 1.0, %v3324_v60 }
 0x6df   :  { %3329 = vrcp.f32 %v2461_v48 }
 0x6e0   :  { %3331 = vrcp.f32 %v2462_v6 }
 0x6ea   :  { %v3328_v54 = vpop.eup %3327 }
 0x6eb   :  { %v2471_v61 = vmul.f32 %v3328_v54, %v3326_v0 }
 0x6ec   :  { %v3330_v52 = vpop.eup %3329 }
 0x6ed   :  { %v2470_v8 = vmul.f32 %v3330_v52, %v4134_v12  ;;  %v3332_v19 = vpop.eup %3331 }
 0x6ef   :  { %v2472_v10 = vadd.f32 %v2471_v61, %v2470_v8 }
 0x6f1   :  { %3333 = vtanh.f32 %v2472_v10 }
 0x6fe   :  { %v3334_v30 = vpop.eup %3333 }
 0x6ff   :  { %v2474_v31 = vmul.f32 %v3334_v30, %v3332_v19 }
 0x701   :  { %3078 = vst [vmem:[%s4197_s4 + $0x30] sm:$0xff] %v2474_v31  ;;  %v2484_v33 = vpack.c.bf16 %v2474_v31, %v2474_v31 }
 0x703   :  { %2710 = vmatmul.mubr.bf16.vlgmr.msra.gmra.mxu0 %v2484_v33  ;;  %2751 = vmatmul.mubr.bf16.vlgmr.msra.gmra.mxu1 %v2484_v33 }
 0x7c3   :  { %v2711_v34 = vpop.f32.mrf.mxu0  ;;  %v2752_v35 = vpop.f32.mrf.mxu1 }
 0x7c4   :  { %v2759_v37 = vadd.f32 %v2711_v34, %v4239_v36  ;;  %v2761_v17 = vadd.f32 %v2752_v35, %v4240_v16 }
 0x7c5   :  { %v2713_v39 = vpop.f32.mrf.mxu0  ;;  %v2754_v40 = vpop.f32.mrf.mxu1 }
 0x7c6   :  { %v3111_v4 = vmul.f32 -1.442695, %v2759_v37  ;;  %v2760_v32 = vadd.f32 %v2713_v39, %v3739_v3  ;;  %v3113_v18 = vmul.f32 -1.442695, %v2761_v17  ;;  %v2762_v38 = vadd.f32 %v2754_v40, %v3742_v14 }
 0x7c7   :  { %v2715_v5 = vpop.f32.mrf.mxu0  ;;  %v2756_v50 = vpop.f32.mrf.mxu1 }
 0x7c8   :  { %3335 = vpow2.f32 %v3111_v4  ;;  %v3112_v11 = vmul.f32 -1.442695, %v2760_v32 }
 0x7c9   :  { %v2716_v13 = vpop.f32.mrf.mxu0  ;;  %v2757_v15 = vpop.f32.mrf.mxu1 }
 0x7ca   :  { %3337 = vpow2.f32 %v3112_v11 }
 0x7cb   :  { %3339 = vpow2.f32 %v3113_v18 }
 0x7cc   :  { %3341 = vtanh.f32 %v2762_v38 }
 0x7d5   :  { %v3336_v20 = vpop.eup %3335 }
 0x7d6   :  { %v2772_v21 = vadd.f32 1.0, %v3336_v20 }
 0x7d7   :  { %v3338_v22 = vpop.eup %3337 }
 0x7d8   :  { %3343 = vrcp.f32 %v2772_v21  ;;  %v2773_v23 = vadd.f32 1.0, %v3338_v22  ;;  %v3340_v3 = vpop.eup %3339 }
 0x7d9   :  { %v3342_v24 = vpop.eup %3341  ;;  %v2774_v28 = vadd.f32 1.0, %v3340_v3 }
 0x7da   :  { %3345 = vrcp.f32 %v2773_v23 }
 0x7db   :  { %3347 = vrcp.f32 %v2774_v28 }
 0x7e5   :  { %v3344_v12 = vpop.eup %3343 }
 0x7e6   :  { %v2783_v26 = vmul.f32 %v3344_v12, %v3342_v24 }
 0x7e7   :  { %v3346_v27 = vpop.eup %3345 }
 0x7e8   :  { %v2782_v29 = vmul.f32 %v3346_v27, %v2472_v10  ;;  %v3348_v14 = vpop.eup %3347 }
 0x7ea   :  { %v2784_v56 = vadd.f32 %v2783_v26, %v2782_v29 }
 0x7ec   :  { %3349 = vtanh.f32 %v2784_v56  ;;  %2792 = vst [vmem:[%s4198_s6] sm:$0xff] %v2784_v56 }
 0x7f9   :  { %v3350_v58 = vpop.eup %3349 }
 0x7fa   :  { %v2786_v25 = vmul.f32 %v3350_v58, %v3348_v14 }
 0x7fc   :  { %3114 = vst [vmem:[%s4197_s4 + $0x38] sm:$0xff] %v2786_v25  ;;  %2791 = vst [vmem:[%s4199_s5] sm:$0xff] %v2786_v25 }

</bundles_post_ra>
